<compile_context>
chip_gen: v7x
topology: tpu7x:2x2x1
jax: 0.10.0
libtpu: 0.0.40
codegen_flags: <defaults>
</compile_context>

<pallas_src>
import jax
import jax.numpy as jnp
from jax.experimental import pallas as pl
from jax.experimental.pallas import tpu as pltpu

# ----- small, forward-consistent sizes ---------------------------------------
N_MASHUP = 8
N_API = 8
N_NODES = N_MASHUP + N_API        # 16
EMB = 32                          # args_config.dim
LOCAL = EMB // 2                  # local_emb = 16
TAU = 0.6
SAGE_W = 2 * LOCAL + EMB          # 64  : packed [tag | sem | invoke] lane width
FC_W = 2 * LOCAL + 2 * EMB        # 96  : packed [fc1 | fc2 | fc3 | fc4] lane width

# ----- packed weight-slab row offsets (one f32 slab, lane width 192) ----------
R_W1 = 0                          # (EMB,    2*SAGE_W) = (32, 128)  layer-1 [Ws|Wn]
R_W2 = R_W1 + EMB                 # (SAGE_W, 2*SAGE_W) = (64, 128)  layer-2 [Ws|Wn]
R_WF1 = R_W2 + SAGE_W             # (SAGE_W, 2*FC_W)   = (64, 192)  fc first layer [A|B]
R_WF2 = R_WF1 + SAGE_W            # (FC_W,   FC_W)     = (96, 96)   fc second layer
R_B1 = R_WF2 + FC_W               # 256 : layer-1 bias   (1, 64)
R_B2 = R_B1 + 1                   # 257 : layer-2 bias   (1, 64)
R_BF1 = R_B2 + 1                  # 258 : fc-1 bias      (1, 192)
R_BF2 = R_BF1 + 1                 # 259 : fc-2 bias      (1, 96)
SLAB_ROWS = 264                   # padded to a multiple of 8
SLAB_COLS = 2 * FC_W              # 192


# ----- the single fused kernel ------------------------------------------------
def mgcl_kernel(x_ref, adj_ref, w_ref, node_ref, loss_ref):
    f32 = jnp.float32
    x = x_ref[...]                 # (16, 32) node features
    adj = adj_ref[...]             # (48, 16) row-stacked [adj_t; adj_s; adj_g]

    def dot(a, b):
        # default precision is fine here (no bit-exact parity requirement)
        return jnp.dot(a, b, preferred_element_type=f32)

    # One hoisted column-index iota shared by both SAGE layers
    # (branch column blocks: tag [0:16) | sem [16:32) | invoke [32:64)).
    col = jax.lax.broadcasted_iota(jnp.int32, (N_NODES, SAGE_W), 1)
    is_tag = col < LOCAL
    is_tag_or_sem = col < 2 * LOCAL

    def sage_layer(feat, wpack, bias):
        # wpack = [Ws | Wn], all three branches column-packed -> 2 MXU ops/layer.
        y = dot(feat, wpack)                               # (16, 128)
        ys = y[:, 0:SAGE_W]                                # fc_self(feat)
        yn = y[:, SAGE_W:2 * SAGE_W]                       # fc_neigh(feat), pre-aggregation
        p = dot(adj, yn)                                   # (48, 64) rows [t | s | g]
        # (adj_b @ feat) @ Wn_b == adj_b @ (feat @ Wn_b); pick each branch's
        # column block from its own adjacency's row block (2 cheap selects).
        neigh = jnp.where(is_tag, p[0:N_NODES, :],
                          jnp.where(is_tag_or_sem,
                                    p[N_NODES:2 * N_NODES, :],
                                    p[2 * N_NODES:3 * N_NODES, :]))
        return ys + neigh + bias

    # ---------------- GraphSAGE: all three branches, column-packed ------------
    h = jnp.maximum(
        sage_layer(x, w_ref[R_W1:R_W1 + EMB, 0:2 * SAGE_W],
                   w_ref[R_B1:R_B1 + 1, 0:SAGE_W]), 0.0)           # (16, 64)
    emb = sage_layer(h, w_ref[R_W2:R_W2 + SAGE_W, 0:2 * SAGE_W],
                     w_ref[R_B2:R_B2 + 1, 0:SAGE_W])               # (16, 64) [tag|sem|invoke]

    # node_emd = cat([tag, sem, invoke], -1) (mashup rows 0..7, api rows 8..15)
    node_ref[...] = emb

    # -------- all 8 fc-head applications in 2 matmuls --------------------------
    # A side: fc1(tag), fc2(tag), fc3([tag|sem]), fc4([tag|sem])   cols [0:96)
    # B side: fc1(sem), fc2(sem), fc3(invoke),    fc4(invoke)      cols [96:192)
    hab = jnp.maximum(dot(emb, w_ref[R_WF1:R_WF1 + SAGE_W, :])
                      + w_ref[R_BF1:R_BF1 + 1, :], 0.0)            # (16, 192)
    hstack = jnp.concatenate([hab[:, 0:FC_W], hab[:, FC_W:2 * FC_W]], axis=0)  # (32, 96)
    fstack = (dot(hstack, w_ref[R_WF2:R_WF2 + FC_W, 0:FC_W])
              + w_ref[R_BF2:R_BF2 + 1, 0:FC_W])                    # (32, 96)
    fa = fstack[0:N_NODES, :]                                      # A-side heads per node
    fb = fstack[N_NODES:2 * N_NODES, :]                            # B-side heads per node

    def info_nce(A, B):
        """Symmetric InfoNCE (tau=0.6) on (n,d) views A, B; one matmul total."""
        n = A.shape[0]
        C = jnp.concatenate([A, B], axis=0)                        # (2n, d)
        # F.normalize(z, dim=1)  ==  z * rsqrt(max(|z|^2, eps^2))
        Cn = C * jax.lax.rsqrt(
            jnp.maximum(jnp.sum(C * C, axis=1, keepdims=True), 1e-24))
        # exp(C C^T / tau) holds all four blocks [[AA, AB], [BA, BB]].
        S = jnp.exp(jnp.einsum('id,jd->ij', Cn, Cn,
                               preferred_element_type=f32) / TAU)  # (2n, 2n)
        diag = jnp.exp(jnp.sum(Cn * Cn, axis=1, keepdims=True) / TAU)      # refl diag
        s_ab = jnp.sum(Cn[0:n, :] * Cn[n:2 * n, :], axis=1, keepdims=True) / TAU
        den = jnp.sum(S, axis=1, keepdims=True) - diag             # refl.sum + betw.sum - refl.diag
        # mean(0.5*(loss_1 + loss_2)) == mean(log den over 2n rows) - mean(s_ab)
        return jnp.mean(jnp.log(den)) - jnp.mean(s_ab)

    m_loss1 = info_nce(fa[0:N_MASHUP, 0:LOCAL],
                       fb[0:N_MASHUP, 0:LOCAL])
    a_loss1 = info_nce(fa[N_MASHUP:N_NODES, LOCAL:2 * LOCAL],
                       fb[N_MASHUP:N_NODES, LOCAL:2 * LOCAL])
    m_loss2 = info_nce(fa[0:N_MASHUP, 2 * LOCAL:2 * LOCAL + EMB],
                       fb[0:N_MASHUP, 2 * LOCAL:2 * LOCAL + EMB])
    a_loss2 = info_nce(fa[N_MASHUP:N_NODES, 2 * LOCAL + EMB:FC_W],
                       fb[N_MASHUP:N_NODES, 2 * LOCAL + EMB:FC_W])

    loss = 0.4 * (m_loss1 + a_loss1) + 0.6 * (m_loss2 + a_loss2)
    loss_ref[...] = jnp.broadcast_to(loss, (1, 1))


# ----- wrapper: single pallas_call, no grid, everything resident in VMEM -------
def recommender_forward(x, adj_stack, wslab):
    node_emd, loss = pl.pallas_call(
        mgcl_kernel,
        out_shape=(jax.ShapeDtypeStruct((N_NODES, 2 * EMB), jnp.float32),
                   jax.ShapeDtypeStruct((1, 1), jnp.float32)),
        in_specs=[pl.BlockSpec(memory_space=pltpu.MemorySpace.VMEM)] * 3,
        out_specs=(pl.BlockSpec(memory_space=pltpu.MemorySpace.VMEM),
                   pl.BlockSpec(memory_space=pltpu.MemorySpace.VMEM)),
    )(x, adj_stack, wslab)
    return node_emd, loss[0, 0]


# ----- one-off wrapper-side weight / adjacency packing -------------------------
def _place(shape, blocks):
    w = jnp.zeros(shape, jnp.float32)
    for r0, c0, m in blocks:
        w = w.at[r0:r0 + m.shape[0], c0:c0 + m.shape[1]].set(m)
    return w


def pack_adjacency(adj_t, adj_s, adj_g):
    # row order matches the kernel's branch column blocks: tag | sem | invoke
    return jnp.concatenate([adj_t, adj_s, adj_g], axis=0)          # (3N, N)


def pack_weights(p):
    tag, sem, inv = p['tag'], p['sem'], p['invoke']
    fc = [p['fc1'], p['fc2'], p['fc3'], p['fc4']]

    # layer-1 [Ws | Wn] (32, 128): branch column blocks tag|sem|invoke in each half
    w1 = _place((EMB, 2 * SAGE_W), [
        (0, 0, tag['c1']['ws']), (0, LOCAL, sem['c1']['ws']), (0, 2 * LOCAL, inv['c1']['ws']),
        (0, SAGE_W, tag['c1']['wn']), (0, SAGE_W + LOCAL, sem['c1']['wn']),
        (0, SAGE_W + 2 * LOCAL, inv['c1']['wn'])])
    b1 = jnp.concatenate([tag['c1']['b'], sem['c1']['b'], inv['c1']['b']], axis=1)

    # layer-2 [Ws | Wn] (64, 128): block-diagonal inside each half
    w2 = _place((SAGE_W, 2 * SAGE_W), [
        (0, 0, tag['c2']['ws']), (LOCAL, LOCAL, sem['c2']['ws']),
        (2 * LOCAL, 2 * LOCAL, inv['c2']['ws']),
        (0, SAGE_W, tag['c2']['wn']), (LOCAL, SAGE_W + LOCAL, sem['c2']['wn']),
        (2 * LOCAL, SAGE_W + 2 * LOCAL, inv['c2']['wn'])])
    b2 = jnp.concatenate([tag['c2']['b'], sem['c2']['b'], inv['c2']['b']], axis=1)

    # fc first layer (64, 192): fc output blocks fc1[0:16)|fc2[16:32)|fc3[32:64)|fc4[64:96)
    c_off = [0, LOCAL, 2 * LOCAL, 2 * LOCAL + EMB]
    a_row = [0, 0, 0, 0]                      # A side reads tag / tag / [tag|sem] / [tag|sem]
    b_row = [LOCAL, LOCAL, 2 * LOCAL, 2 * LOCAL]   # B side reads sem / sem / invoke / invoke
    blocks = []
    for k in range(4):
        blocks.append((a_row[k], c_off[k], fc[k]['w1']))
        blocks.append((b_row[k], FC_W + c_off[k], fc[k]['w1']))
    wf1 = _place((SAGE_W, 2 * FC_W), blocks)
    bf1_side = jnp.concatenate([fc[k]['b1'] for k in range(4)], axis=1)   # (1, 96)
    bf1 = jnp.concatenate([bf1_side, bf1_side], axis=1)                   # (1, 192)

    # fc second layer (96, 96): block-diagonal per head (shared by A/B row blocks)
    wf2 = _place((FC_W, FC_W), [(c_off[k], c_off[k], fc[k]['w2']) for k in range(4)])
    bf2 = jnp.concatenate([fc[k]['b2'] for k in range(4)], axis=1)        # (1, 96)

    slab = jnp.zeros((SLAB_ROWS, SLAB_COLS), jnp.float32)
    slab = slab.at[R_W1:R_W1 + EMB, 0:2 * SAGE_W].set(w1)
    slab = slab.at[R_W2:R_W2 + SAGE_W, 0:2 * SAGE_W].set(w2)
    slab = slab.at[R_WF1:R_WF1 + SAGE_W, :].set(wf1)
    slab = slab.at[R_WF2:R_WF2 + FC_W, 0:FC_W].set(wf2)
    slab = slab.at[R_B1, 0:SAGE_W].set(b1[0])
    slab = slab.at[R_B2, 0:SAGE_W].set(b2[0])
    slab = slab.at[R_BF1, :].set(bf1[0])
    slab = slab.at[R_BF2, 0:FC_W].set(bf2[0])
    return slab


# ----- deterministic parameter / input construction ---------------------------
def xavier(key, shape):
    fan_in, fan_out = shape
    bound = (6.0 / (fan_in + fan_out)) ** 0.5
    return jax.random.uniform(key, shape, jnp.float32, -bound, bound)


def init_linear(key, din, dout):
    k1, k2 = jax.random.split(key)
    w = xavier(k1, (din, dout))
    bb = 1.0 / (din ** 0.5)
    b = jax.random.uniform(k2, (1, dout), jnp.float32, -bb, bb)
    return w, b


def init_mlp2(key, d):
    k1, k2 = jax.random.split(key)
    w1, b1 = init_linear(k1, d, d)
    w2, b2 = init_linear(k2, d, d)
    return dict(w1=w1, b1=b1, w2=w2, b2=b2)


def init_sage(key, din, dout):
    k1, k2, k3 = jax.random.split(key, 3)
    bb = 1.0 / (din ** 0.5)
    return dict(ws=xavier(k1, (din, dout)),
                wn=xavier(k2, (din, dout)),
                b=jax.random.uniform(k3, (1, dout), jnp.float32, -bb, bb))


def init_graphsage(key, din, dh):
    k1, k2 = jax.random.split(key)
    return dict(c1=init_sage(k1, din, dh), c2=init_sage(k2, dh, dh))


def make_adj(key, n, p=0.35):
    # DGL mean-aggregation on a graph == row-normalized dense adjacency matmul
    a = (jax.random.uniform(key, (n, n)) < p).astype(jnp.float32)
    deg = jnp.sum(a, axis=1, keepdims=True)
    return jnp.where(deg > 0, a / jnp.where(deg > 0, deg, 1.0), 0.0)


# ----- main --------------------------------------------------------------------
if __name__ == "__main__":
    key = jax.random.PRNGKey(0)
    ks = jax.random.split(key, 11)

    all_embed = xavier(ks[0], (N_NODES, EMB))
    adj_g = make_adj(ks[1], N_NODES)
    adj_t = make_adj(ks[2], N_NODES)
    adj_s = make_adj(ks[3], N_NODES)

    params = dict(
        invoke=init_graphsage(ks[4], EMB, EMB),
        tag=init_graphsage(ks[5], EMB, LOCAL),
        sem=init_graphsage(ks[6], EMB, LOCAL),
        fc1=init_mlp2(ks[7], LOCAL),
        fc2=init_mlp2(ks[8], LOCAL),
        fc3=init_mlp2(ks[9], EMB),
        fc4=init_mlp2(ks[10], EMB),
    )

    # One-off packing (kept OUT of the per-step forward, per perf review).
    adj_stack = jax.block_until_ready(pack_adjacency(adj_t, adj_s, adj_g))
    wslab = jax.block_until_ready(pack_weights(params))

    fwd = jax.jit(recommender_forward)
    node_emd, loss = fwd(all_embed, adj_stack, wslab)
    jax.block_until_ready((node_emd, loss))

    assert node_emd.shape == (N_NODES, 2 * EMB)
    assert node_emd.dtype == jnp.float32
    assert loss.shape == ()
    assert bool(jnp.isfinite(loss))
    print("KERNEL_OK")
</pallas_src>

<mosaic_0001>
module attributes {stable_mosaic.version = 11 : i64} {
  func.func @mgcl_kernel(%arg0: memref<16x32xf32, #tpu.memory_space<vmem>>, %arg1: memref<48x16xf32, #tpu.memory_space<vmem>>, %arg2: memref<264x192xf32, #tpu.memory_space<vmem>>, %arg3: memref<16x64xf32, #tpu.memory_space<vmem>>, %arg4: memref<1x1xf32, #tpu.memory_space<vmem>>) attributes {dimension_semantics = [], scalar_prefetch = 0 : i64, scratch_operands = 0 : i64, tpu.core_type = #tpu.core_type<tc>} {
    %c0 = arith.constant 0 : index
    %c0_0 = arith.constant 0 : index
    %0 = vector.load %arg0[%c0, %c0_0] : memref<16x32xf32, #tpu.memory_space<vmem>>, vector<16x32xf32>
    %c0_1 = arith.constant 0 : index
    %c0_2 = arith.constant 0 : index
    %1 = vector.load %arg1[%c0_1, %c0_2] : memref<48x16xf32, #tpu.memory_space<vmem>>, vector<48x16xf32>
    %2 = tpu.iota {dimensions = array<i32: 1>} : vector<16x64xi32>
    %c16_i32 = arith.constant 16 : i32
    %3 = vector.broadcast %c16_i32 : i32 to vector<16x64xi32>
    %4 = arith.cmpi slt, %2, %3 : vector<16x64xi32>
    %c32_i32 = arith.constant 32 : i32
    %5 = vector.broadcast %c32_i32 : i32 to vector<16x64xi32>
    %6 = arith.cmpi slt, %2, %5 : vector<16x64xi32>
    %c0_3 = arith.constant 0 : index
    %c0_4 = arith.constant 0 : index
    %7 = vector.load %arg2[%c0_3, %c0_4] : memref<264x192xf32, #tpu.memory_space<vmem>>, vector<32x128xf32>
    %c256 = arith.constant 256 : index
    %c0_5 = arith.constant 0 : index
    %8 = vector.load %arg2[%c256, %c0_5] : memref<264x192xf32, #tpu.memory_space<vmem>>, vector<1x64xf32>
    %cst = arith.constant dense<0.000000e+00> : vector<16x128xf32>
    %9 = tpu.matmul %0, %7, %cst {dimension_numbers = #tpu.dot_dimension_numbers<[1], [0], [0], [1], [0, 0, 1, 1], [], []>} : vector<16x32xf32>, vector<32x128xf32>, vector<16x128xf32> -> vector<16x128xf32>
    %10 = vector.extract_strided_slice %9 {offsets = [0, 0], sizes = [16, 64], strides = [1, 1]} : vector<16x128xf32> to vector<16x64xf32>
    %11 = vector.extract_strided_slice %9 {offsets = [0, 64], sizes = [16, 64], strides = [1, 1]} : vector<16x128xf32> to vector<16x64xf32>
    %cst_6 = arith.constant dense<0.000000e+00> : vector<48x64xf32>
    %12 = tpu.matmul %1, %11, %cst_6 {dimension_numbers = #tpu.dot_dimension_numbers<[1], [0], [0], [1], [0, 0, 1, 1], [], []>} : vector<48x16xf32>, vector<16x64xf32>, vector<48x64xf32> -> vector<48x64xf32>
    %13 = vector.extract_strided_slice %12 {offsets = [0, 0], sizes = [16, 64], strides = [1, 1]} : vector<48x64xf32> to vector<16x64xf32>
    %14 = vector.extract_strided_slice %12 {offsets = [16, 0], sizes = [16, 64], strides = [1, 1]} : vector<48x64xf32> to vector<16x64xf32>
    %15 = vector.extract_strided_slice %12 {offsets = [32, 0], sizes = [16, 64], strides = [1, 1]} : vector<48x64xf32> to vector<16x64xf32>
    %16 = arith.select %6, %14, %15 : vector<16x64xi1>, vector<16x64xf32>
    %17 = arith.select %4, %13, %16 : vector<16x64xi1>, vector<16x64xf32>
    %18 = arith.addf %10, %17 : vector<16x64xf32>
    %19 = vector.broadcast %8 : vector<1x64xf32> to vector<16x64xf32>
    %20 = arith.addf %18, %19 : vector<16x64xf32>
    %cst_7 = arith.constant 0.000000e+00 : f32
    %21 = vector.broadcast %cst_7 : f32 to vector<16x64xf32>
    %22 = arith.maximumf %20, %21 : vector<16x64xf32>
    %c32 = arith.constant 32 : index
    %c0_8 = arith.constant 0 : index
    %23 = vector.load %arg2[%c32, %c0_8] : memref<264x192xf32, #tpu.memory_space<vmem>>, vector<64x128xf32>
    %c257 = arith.constant 257 : index
    %c0_9 = arith.constant 0 : index
    %24 = vector.load %arg2[%c257, %c0_9] : memref<264x192xf32, #tpu.memory_space<vmem>>, vector<1x64xf32>
    %cst_10 = arith.constant dense<0.000000e+00> : vector<16x128xf32>
    %25 = tpu.matmul %22, %23, %cst_10 {dimension_numbers = #tpu.dot_dimension_numbers<[1], [0], [0], [1], [0, 0, 1, 1], [], []>} : vector<16x64xf32>, vector<64x128xf32>, vector<16x128xf32> -> vector<16x128xf32>
    %26 = vector.extract_strided_slice %25 {offsets = [0, 0], sizes = [16, 64], strides = [1, 1]} : vector<16x128xf32> to vector<16x64xf32>
    %27 = vector.extract_strided_slice %25 {offsets = [0, 64], sizes = [16, 64], strides = [1, 1]} : vector<16x128xf32> to vector<16x64xf32>
    %cst_11 = arith.constant dense<0.000000e+00> : vector<48x64xf32>
    %28 = tpu.matmul %1, %27, %cst_11 {dimension_numbers = #tpu.dot_dimension_numbers<[1], [0], [0], [1], [0, 0, 1, 1], [], []>} : vector<48x16xf32>, vector<16x64xf32>, vector<48x64xf32> -> vector<48x64xf32>
    %29 = vector.extract_strided_slice %28 {offsets = [0, 0], sizes = [16, 64], strides = [1, 1]} : vector<48x64xf32> to vector<16x64xf32>
    %30 = vector.extract_strided_slice %28 {offsets = [16, 0], sizes = [16, 64], strides = [1, 1]} : vector<48x64xf32> to vector<16x64xf32>
    %31 = vector.extract_strided_slice %28 {offsets = [32, 0], sizes = [16, 64], strides = [1, 1]} : vector<48x64xf32> to vector<16x64xf32>
    %32 = arith.select %6, %30, %31 : vector<16x64xi1>, vector<16x64xf32>
    %33 = arith.select %4, %29, %32 : vector<16x64xi1>, vector<16x64xf32>
    %34 = arith.addf %26, %33 : vector<16x64xf32>
    %35 = vector.broadcast %24 : vector<1x64xf32> to vector<16x64xf32>
    %36 = arith.addf %34, %35 : vector<16x64xf32>
    %c0_12 = arith.constant 0 : index
    %c0_13 = arith.constant 0 : index
    %37 = vector.load %arg3[%c0_12, %c0_13] : memref<16x64xf32, #tpu.memory_space<vmem>>, vector<16x64xf32>
    tpu.vector_store %arg3[%c0_12, %c0_13], %36 {strides = array<i32>} : memref<16x64xf32, #tpu.memory_space<vmem>>, vector<16x64xf32>,
    %c96 = arith.constant 96 : index
    %c0_14 = arith.constant 0 : index
    %38 = vector.load %arg2[%c96, %c0_14] : memref<264x192xf32, #tpu.memory_space<vmem>>, vector<64x192xf32>
    %cst_15 = arith.constant dense<0.000000e+00> : vector<16x192xf32>
    %39 = tpu.matmul %36, %38, %cst_15 {dimension_numbers = #tpu.dot_dimension_numbers<[1], [0], [0], [1], [0, 0, 1, 1], [], []>} : vector<16x64xf32>, vector<64x192xf32>, vector<16x192xf32> -> vector<16x192xf32>
    %c258 = arith.constant 258 : index
    %c0_16 = arith.constant 0 : index
    %40 = vector.load %arg2[%c258, %c0_16] : memref<264x192xf32, #tpu.memory_space<vmem>>, vector<1x192xf32>
    %41 = vector.broadcast %40 : vector<1x192xf32> to vector<16x192xf32>
    %42 = arith.addf %39, %41 : vector<16x192xf32>
    %cst_17 = arith.constant 0.000000e+00 : f32
    %43 = vector.broadcast %cst_17 : f32 to vector<16x192xf32>
    %44 = arith.maximumf %42, %43 : vector<16x192xf32>
    %45 = vector.extract_strided_slice %44 {offsets = [0, 0], sizes = [16, 96], strides = [1, 1]} : vector<16x192xf32> to vector<16x96xf32>
    %46 = vector.extract_strided_slice %44 {offsets = [0, 96], sizes = [16, 96], strides = [1, 1]} : vector<16x192xf32> to vector<16x96xf32>
    %47 = tpu.concatenate %45, %46 in 0 : vector<16x96xf32>, vector<16x96xf32> -> vector<32x96xf32>
    %c160 = arith.constant 160 : index
    %c0_18 = arith.constant 0 : index
    %48 = vector.load %arg2[%c160, %c0_18] : memref<264x192xf32, #tpu.memory_space<vmem>>, vector<96x96xf32>
    %cst_19 = arith.constant dense<0.000000e+00> : vector<32x96xf32>
    %49 = tpu.matmul %47, %48, %cst_19 {dimension_numbers = #tpu.dot_dimension_numbers<[1], [0], [0], [1], [0, 0, 1, 1], [], []>} : vector<32x96xf32>, vector<96x96xf32>, vector<32x96xf32> -> vector<32x96xf32>
    %c259 = arith.constant 259 : index
    %c0_20 = arith.constant 0 : index
    %50 = vector.load %arg2[%c259, %c0_20] : memref<264x192xf32, #tpu.memory_space<vmem>>, vector<1x96xf32>
    %51 = vector.broadcast %50 : vector<1x96xf32> to vector<32x96xf32>
    %52 = arith.addf %49, %51 : vector<32x96xf32>
    %53 = vector.extract_strided_slice %52 {offsets = [0, 0], sizes = [16, 96], strides = [1, 1]} : vector<32x96xf32> to vector<16x96xf32>
    %54 = vector.extract_strided_slice %52 {offsets = [16, 0], sizes = [16, 96], strides = [1, 1]} : vector<32x96xf32> to vector<16x96xf32>
    %55 = vector.extract_strided_slice %53 {offsets = [0, 0], sizes = [8, 16], strides = [1, 1]} : vector<16x96xf32> to vector<8x16xf32>
    %56 = vector.extract_strided_slice %54 {offsets = [0, 0], sizes = [8, 16], strides = [1, 1]} : vector<16x96xf32> to vector<8x16xf32>
    %57 = tpu.concatenate %55, %56 in 0 : vector<8x16xf32>, vector<8x16xf32> -> vector<16x16xf32>
    %58 = arith.mulf %57, %57 : vector<16x16xf32>
    %cst_21 = arith.constant dense<0.000000e+00> : vector<16xf32>
    %59 = vector.multi_reduction <add>, %58, %cst_21 [1] : vector<16x16xf32> to vector<16xf32>
    %60 = vector.shape_cast %59 : vector<16xf32> to vector<16x1xf32>
    %cst_22 = arith.constant 1.000000e-24 : f32
    %61 = vector.broadcast %cst_22 : f32 to vector<16x1xf32>
    %62 = arith.maximumf %60, %61 : vector<16x1xf32>
    %63 = math.rsqrt %62 : vector<16x1xf32>
    %64 = vector.broadcast %63 : vector<16x1xf32> to vector<16x16xf32>
    %65 = arith.mulf %57, %64 : vector<16x16xf32>
    "tpu.trace_start"() <{level = 10 : i32, message = "id,jd->ij"}> : () -> ()
    %cst_23 = arith.constant dense<0.000000e+00> : vector<16x16xf32>
    %66 = tpu.matmul %65, %65, %cst_23 {dimension_numbers = #tpu.dot_dimension_numbers<[1], [1], [0], [0], [0, 0, 1, 0], [], []>} : vector<16x16xf32>, vector<16x16xf32>, vector<16x16xf32> -> vector<16x16xf32>
    "tpu.trace_stop"() : () -> ()
    %cst_24 = arith.constant 6.000000e-01 : f32
    %67 = vector.broadcast %cst_24 : f32 to vector<16x16xf32>
    %68 = arith.divf %66, %67 : vector<16x16xf32>
    %69 = math.exp %68 : vector<16x16xf32>
    %70 = arith.mulf %65, %65 : vector<16x16xf32>
    %cst_25 = arith.constant dense<0.000000e+00> : vector<16xf32>
    %71 = vector.multi_reduction <add>, %70, %cst_25 [1] : vector<16x16xf32> to vector<16xf32>
    %72 = vector.shape_cast %71 : vector<16xf32> to vector<16x1xf32>
    %cst_26 = arith.constant 6.000000e-01 : f32
    %73 = vector.broadcast %cst_26 : f32 to vector<16x1xf32>
    %74 = arith.divf %72, %73 : vector<16x1xf32>
    %75 = math.exp %74 : vector<16x1xf32>
    %76 = vector.extract_strided_slice %65 {offsets = [0, 0], sizes = [8, 16], strides = [1, 1]} : vector<16x16xf32> to vector<8x16xf32>
    %77 = vector.extract_strided_slice %65 {offsets = [8, 0], sizes = [8, 16], strides = [1, 1]} : vector<16x16xf32> to vector<8x16xf32>
    %78 = arith.mulf %76, %77 : vector<8x16xf32>
    %cst_27 = arith.constant dense<0.000000e+00> : vector<8xf32>
    %79 = vector.multi_reduction <add>, %78, %cst_27 [1] : vector<8x16xf32> to vector<8xf32>
    %80 = vector.shape_cast %79 : vector<8xf32> to vector<8x1xf32>
    %cst_28 = arith.constant 6.000000e-01 : f32
    %81 = vector.broadcast %cst_28 : f32 to vector<8x1xf32>
    %82 = arith.divf %80, %81 : vector<8x1xf32>
    %cst_29 = arith.constant dense<0.000000e+00> : vector<16xf32>
    %83 = vector.multi_reduction <add>, %69, %cst_29 [1] : vector<16x16xf32> to vector<16xf32>
    %84 = vector.shape_cast %83 : vector<16xf32> to vector<16x1xf32>
    %85 = arith.subf %84, %75 : vector<16x1xf32>
    %86 = math.log %85 : vector<16x1xf32>
    %87 = vector.shape_cast %86 : vector<16x1xf32> to vector<1x16x1xf32>
    %cst_30 = arith.constant dense<0.000000e+00> : vector<1xf32>
    %88 = vector.multi_reduction <add>, %87, %cst_30 [1, 2] : vector<1x16x1xf32> to vector<1xf32>
    %89 = vector.shape_cast %88 : vector<1xf32> to vector<1x1x1xf32>
    %90 = vector.extract %89[0, 0, 0] : f32 from vector<1x1x1xf32>
    %cst_31 = arith.constant 1.600000e+01 : f32
    %91 = arith.divf %90, %cst_31 : f32
    %92 = vector.shape_cast %82 : vector<8x1xf32> to vector<1x8x1xf32>
    %cst_32 = arith.constant dense<0.000000e+00> : vector<1xf32>
    %93 = vector.multi_reduction <add>, %92, %cst_32 [1, 2] : vector<1x8x1xf32> to vector<1xf32>
    %94 = vector.shape_cast %93 : vector<1xf32> to vector<1x1x1xf32>
    %95 = vector.extract %94[0, 0, 0] : f32 from vector<1x1x1xf32>
    %cst_33 = arith.constant 8.000000e+00 : f32
    %96 = arith.divf %95, %cst_33 : f32
    %97 = arith.subf %91, %96 : f32
    %98 = vector.extract_strided_slice %53 {offsets = [8, 16], sizes = [8, 16], strides = [1, 1]} : vector<16x96xf32> to vector<8x16xf32>
    %99 = vector.extract_strided_slice %54 {offsets = [8, 16], sizes = [8, 16], strides = [1, 1]} : vector<16x96xf32> to vector<8x16xf32>
    %100 = tpu.concatenate %98, %99 in 0 : vector<8x16xf32>, vector<8x16xf32> -> vector<16x16xf32>
    %101 = arith.mulf %100, %100 : vector<16x16xf32>
    %cst_34 = arith.constant dense<0.000000e+00> : vector<16xf32>
    %102 = vector.multi_reduction <add>, %101, %cst_34 [1] : vector<16x16xf32> to vector<16xf32>
    %103 = vector.shape_cast %102 : vector<16xf32> to vector<16x1xf32>
    %cst_35 = arith.constant 1.000000e-24 : f32
    %104 = vector.broadcast %cst_35 : f32 to vector<16x1xf32>
    %105 = arith.maximumf %103, %104 : vector<16x1xf32>
    %106 = math.rsqrt %105 : vector<16x1xf32>
    %107 = vector.broadcast %106 : vector<16x1xf32> to vector<16x16xf32>
    %108 = arith.mulf %100, %107 : vector<16x16xf32>
    "tpu.trace_start"() <{level = 10 : i32, message = "id,jd->ij"}> : () -> ()
    %cst_36 = arith.constant dense<0.000000e+00> : vector<16x16xf32>
    %109 = tpu.matmul %108, %108, %cst_36 {dimension_numbers = #tpu.dot_dimension_numbers<[1], [1], [0], [0], [0, 0, 1, 0], [], []>} : vector<16x16xf32>, vector<16x16xf32>, vector<16x16xf32> -> vector<16x16xf32>
    "tpu.trace_stop"() : () -> ()
    %cst_37 = arith.constant 6.000000e-01 : f32
    %110 = vector.broadcast %cst_37 : f32 to vector<16x16xf32>
    %111 = arith.divf %109, %110 : vector<16x16xf32>
    %112 = math.exp %111 : vector<16x16xf32>
    %113 = arith.mulf %108, %108 : vector<16x16xf32>
    %cst_38 = arith.constant dense<0.000000e+00> : vector<16xf32>
    %114 = vector.multi_reduction <add>, %113, %cst_38 [1] : vector<16x16xf32> to vector<16xf32>
    %115 = vector.shape_cast %114 : vector<16xf32> to vector<16x1xf32>
    %cst_39 = arith.constant 6.000000e-01 : f32
    %116 = vector.broadcast %cst_39 : f32 to vector<16x1xf32>
    %117 = arith.divf %115, %116 : vector<16x1xf32>
    %118 = math.exp %117 : vector<16x1xf32>
    %119 = vector.extract_strided_slice %108 {offsets = [0, 0], sizes = [8, 16], strides = [1, 1]} : vector<16x16xf32> to vector<8x16xf32>
    %120 = vector.extract_strided_slice %108 {offsets = [8, 0], sizes = [8, 16], strides = [1, 1]} : vector<16x16xf32> to vector<8x16xf32>
    %121 = arith.mulf %119, %120 : vector<8x16xf32>
    %cst_40 = arith.constant dense<0.000000e+00> : vector<8xf32>
    %122 = vector.multi_reduction <add>, %121, %cst_40 [1] : vector<8x16xf32> to vector<8xf32>
    %123 = vector.shape_cast %122 : vector<8xf32> to vector<8x1xf32>
    %cst_41 = arith.constant 6.000000e-01 : f32
    %124 = vector.broadcast %cst_41 : f32 to vector<8x1xf32>
    %125 = arith.divf %123, %124 : vector<8x1xf32>
    %cst_42 = arith.constant dense<0.000000e+00> : vector<16xf32>
    %126 = vector.multi_reduction <add>, %112, %cst_42 [1] : vector<16x16xf32> to vector<16xf32>
    %127 = vector.shape_cast %126 : vector<16xf32> to vector<16x1xf32>
    %128 = arith.subf %127, %118 : vector<16x1xf32>
    %129 = math.log %128 : vector<16x1xf32>
    %130 = vector.shape_cast %129 : vector<16x1xf32> to vector<1x16x1xf32>
    %cst_43 = arith.constant dense<0.000000e+00> : vector<1xf32>
    %131 = vector.multi_reduction <add>, %130, %cst_43 [1, 2] : vector<1x16x1xf32> to vector<1xf32>
    %132 = vector.shape_cast %131 : vector<1xf32> to vector<1x1x1xf32>
    %133 = vector.extract %132[0, 0, 0] : f32 from vector<1x1x1xf32>
    %cst_44 = arith.constant 1.600000e+01 : f32
    %134 = arith.divf %133, %cst_44 : f32
    %135 = vector.shape_cast %125 : vector<8x1xf32> to vector<1x8x1xf32>
    %cst_45 = arith.constant dense<0.000000e+00> : vector<1xf32>
    %136 = vector.multi_reduction <add>, %135, %cst_45 [1, 2] : vector<1x8x1xf32> to vector<1xf32>
    %137 = vector.shape_cast %136 : vector<1xf32> to vector<1x1x1xf32>
    %138 = vector.extract %137[0, 0, 0] : f32 from vector<1x1x1xf32>
    %cst_46 = arith.constant 8.000000e+00 : f32
    %139 = arith.divf %138, %cst_46 : f32
    %140 = arith.subf %134, %139 : f32
    %141 = vector.extract_strided_slice %53 {offsets = [0, 32], sizes = [8, 32], strides = [1, 1]} : vector<16x96xf32> to vector<8x32xf32>
    %142 = vector.extract_strided_slice %54 {offsets = [0, 32], sizes = [8, 32], strides = [1, 1]} : vector<16x96xf32> to vector<8x32xf32>
    %143 = tpu.concatenate %141, %142 in 0 : vector<8x32xf32>, vector<8x32xf32> -> vector<16x32xf32>
    %144 = arith.mulf %143, %143 : vector<16x32xf32>
    %cst_47 = arith.constant dense<0.000000e+00> : vector<16xf32>
    %145 = vector.multi_reduction <add>, %144, %cst_47 [1] : vector<16x32xf32> to vector<16xf32>
    %146 = vector.shape_cast %145 : vector<16xf32> to vector<16x1xf32>
    %cst_48 = arith.constant 1.000000e-24 : f32
    %147 = vector.broadcast %cst_48 : f32 to vector<16x1xf32>
    %148 = arith.maximumf %146, %147 : vector<16x1xf32>
    %149 = math.rsqrt %148 : vector<16x1xf32>
    %150 = vector.broadcast %149 : vector<16x1xf32> to vector<16x32xf32>
    %151 = arith.mulf %143, %150 : vector<16x32xf32>
    "tpu.trace_start"() <{level = 10 : i32, message = "id,jd->ij"}> : () -> ()
    %cst_49 = arith.constant dense<0.000000e+00> : vector<16x16xf32>
    %152 = tpu.matmul %151, %151, %cst_49 {dimension_numbers = #tpu.dot_dimension_numbers<[1], [1], [0], [0], [0, 0, 1, 0], [], []>} : vector<16x32xf32>, vector<16x32xf32>, vector<16x16xf32> -> vector<16x16xf32>
    "tpu.trace_stop"() : () -> ()
    %cst_50 = arith.constant 6.000000e-01 : f32
    %153 = vector.broadcast %cst_50 : f32 to vector<16x16xf32>
    %154 = arith.divf %152, %153 : vector<16x16xf32>
    %155 = math.exp %154 : vector<16x16xf32>
    %156 = arith.mulf %151, %151 : vector<16x32xf32>
    %cst_51 = arith.constant dense<0.000000e+00> : vector<16xf32>
    %157 = vector.multi_reduction <add>, %156, %cst_51 [1] : vector<16x32xf32> to vector<16xf32>
    %158 = vector.shape_cast %157 : vector<16xf32> to vector<16x1xf32>
    %cst_52 = arith.constant 6.000000e-01 : f32
    %159 = vector.broadcast %cst_52 : f32 to vector<16x1xf32>
    %160 = arith.divf %158, %159 : vector<16x1xf32>
    %161 = math.exp %160 : vector<16x1xf32>
    %162 = vector.extract_strided_slice %151 {offsets = [0, 0], sizes = [8, 32], strides = [1, 1]} : vector<16x32xf32> to vector<8x32xf32>
    %163 = vector.extract_strided_slice %151 {offsets = [8, 0], sizes = [8, 32], strides = [1, 1]} : vector<16x32xf32> to vector<8x32xf32>
    %164 = arith.mulf %162, %163 : vector<8x32xf32>
    %cst_53 = arith.constant dense<0.000000e+00> : vector<8xf32>
    %165 = vector.multi_reduction <add>, %164, %cst_53 [1] : vector<8x32xf32> to vector<8xf32>
    %166 = vector.shape_cast %165 : vector<8xf32> to vector<8x1xf32>
    %cst_54 = arith.constant 6.000000e-01 : f32
    %167 = vector.broadcast %cst_54 : f32 to vector<8x1xf32>
    %168 = arith.divf %166, %167 : vector<8x1xf32>
    %cst_55 = arith.constant dense<0.000000e+00> : vector<16xf32>
    %169 = vector.multi_reduction <add>, %155, %cst_55 [1] : vector<16x16xf32> to vector<16xf32>
    %170 = vector.shape_cast %169 : vector<16xf32> to vector<16x1xf32>
    %171 = arith.subf %170, %161 : vector<16x1xf32>
    %172 = math.log %171 : vector<16x1xf32>
    %173 = vector.shape_cast %172 : vector<16x1xf32> to vector<1x16x1xf32>
    %cst_56 = arith.constant dense<0.000000e+00> : vector<1xf32>
    %174 = vector.multi_reduction <add>, %173, %cst_56 [1, 2] : vector<1x16x1xf32> to vector<1xf32>
    %175 = vector.shape_cast %174 : vector<1xf32> to vector<1x1x1xf32>
    %176 = vector.extract %175[0, 0, 0] : f32 from vector<1x1x1xf32>
    %cst_57 = arith.constant 1.600000e+01 : f32
    %177 = arith.divf %176, %cst_57 : f32
    %178 = vector.shape_cast %168 : vector<8x1xf32> to vector<1x8x1xf32>
    %cst_58 = arith.constant dense<0.000000e+00> : vector<1xf32>
    %179 = vector.multi_reduction <add>, %178, %cst_58 [1, 2] : vector<1x8x1xf32> to vector<1xf32>
    %180 = vector.shape_cast %179 : vector<1xf32> to vector<1x1x1xf32>
    %181 = vector.extract %180[0, 0, 0] : f32 from vector<1x1x1xf32>
    %cst_59 = arith.constant 8.000000e+00 : f32
    %182 = arith.divf %181, %cst_59 : f32
    %183 = arith.subf %177, %182 : f32
    %184 = vector.extract_strided_slice %53 {offsets = [8, 64], sizes = [8, 32], strides = [1, 1]} : vector<16x96xf32> to vector<8x32xf32>
    %185 = vector.extract_strided_slice %54 {offsets = [8, 64], sizes = [8, 32], strides = [1, 1]} : vector<16x96xf32> to vector<8x32xf32>
    %186 = tpu.concatenate %184, %185 in 0 : vector<8x32xf32>, vector<8x32xf32> -> vector<16x32xf32>
    %187 = arith.mulf %186, %186 : vector<16x32xf32>
    %cst_60 = arith.constant dense<0.000000e+00> : vector<16xf32>
    %188 = vector.multi_reduction <add>, %187, %cst_60 [1] : vector<16x32xf32> to vector<16xf32>
    %189 = vector.shape_cast %188 : vector<16xf32> to vector<16x1xf32>
    %cst_61 = arith.constant 1.000000e-24 : f32
    %190 = vector.broadcast %cst_61 : f32 to vector<16x1xf32>
    %191 = arith.maximumf %189, %190 : vector<16x1xf32>
    %192 = math.rsqrt %191 : vector<16x1xf32>
    %193 = vector.broadcast %192 : vector<16x1xf32> to vector<16x32xf32>
    %194 = arith.mulf %186, %193 : vector<16x32xf32>
    "tpu.trace_start"() <{level = 10 : i32, message = "id,jd->ij"}> : () -> ()
    %cst_62 = arith.constant dense<0.000000e+00> : vector<16x16xf32>
    %195 = tpu.matmul %194, %194, %cst_62 {dimension_numbers = #tpu.dot_dimension_numbers<[1], [1], [0], [0], [0, 0, 1, 0], [], []>} : vector<16x32xf32>, vector<16x32xf32>, vector<16x16xf32> -> vector<16x16xf32>
    "tpu.trace_stop"() : () -> ()
    %cst_63 = arith.constant 6.000000e-01 : f32
    %196 = vector.broadcast %cst_63 : f32 to vector<16x16xf32>
    %197 = arith.divf %195, %196 : vector<16x16xf32>
    %198 = math.exp %197 : vector<16x16xf32>
    %199 = arith.mulf %194, %194 : vector<16x32xf32>
    %cst_64 = arith.constant dense<0.000000e+00> : vector<16xf32>
    %200 = vector.multi_reduction <add>, %199, %cst_64 [1] : vector<16x32xf32> to vector<16xf32>
    %201 = vector.shape_cast %200 : vector<16xf32> to vector<16x1xf32>
    %cst_65 = arith.constant 6.000000e-01 : f32
    %202 = vector.broadcast %cst_65 : f32 to vector<16x1xf32>
    %203 = arith.divf %201, %202 : vector<16x1xf32>
    %204 = math.exp %203 : vector<16x1xf32>
    %205 = vector.extract_strided_slice %194 {offsets = [0, 0], sizes = [8, 32], strides = [1, 1]} : vector<16x32xf32> to vector<8x32xf32>
    %206 = vector.extract_strided_slice %194 {offsets = [8, 0], sizes = [8, 32], strides = [1, 1]} : vector<16x32xf32> to vector<8x32xf32>
    %207 = arith.mulf %205, %206 : vector<8x32xf32>
    %cst_66 = arith.constant dense<0.000000e+00> : vector<8xf32>
    %208 = vector.multi_reduction <add>, %207, %cst_66 [1] : vector<8x32xf32> to vector<8xf32>
    %209 = vector.shape_cast %208 : vector<8xf32> to vector<8x1xf32>
    %cst_67 = arith.constant 6.000000e-01 : f32
    %210 = vector.broadcast %cst_67 : f32 to vector<8x1xf32>
    %211 = arith.divf %209, %210 : vector<8x1xf32>
    %cst_68 = arith.constant dense<0.000000e+00> : vector<16xf32>
    %212 = vector.multi_reduction <add>, %198, %cst_68 [1] : vector<16x16xf32> to vector<16xf32>
    %213 = vector.shape_cast %212 : vector<16xf32> to vector<16x1xf32>
    %214 = arith.subf %213, %204 : vector<16x1xf32>
    %215 = math.log %214 : vector<16x1xf32>
    %216 = vector.shape_cast %215 : vector<16x1xf32> to vector<1x16x1xf32>
    %cst_69 = arith.constant dense<0.000000e+00> : vector<1xf32>
    %217 = vector.multi_reduction <add>, %216, %cst_69 [1, 2] : vector<1x16x1xf32> to vector<1xf32>
    %218 = vector.shape_cast %217 : vector<1xf32> to vector<1x1x1xf32>
    %219 = vector.extract %218[0, 0, 0] : f32 from vector<1x1x1xf32>
    %cst_70 = arith.constant 1.600000e+01 : f32
    %220 = arith.divf %219, %cst_70 : f32
    %221 = vector.shape_cast %211 : vector<8x1xf32> to vector<1x8x1xf32>
    %cst_71 = arith.constant dense<0.000000e+00> : vector<1xf32>
    %222 = vector.multi_reduction <add>, %221, %cst_71 [1, 2] : vector<1x8x1xf32> to vector<1xf32>
    %223 = vector.shape_cast %222 : vector<1xf32> to vector<1x1x1xf32>
    %224 = vector.extract %223[0, 0, 0] : f32 from vector<1x1x1xf32>
    %cst_72 = arith.constant 8.000000e+00 : f32
    %225 = arith.divf %224, %cst_72 : f32
    %226 = arith.subf %220, %225 : f32
    %227 = arith.addf %97, %140 : f32
    %cst_73 = arith.constant 4.000000e-01 : f32
    %228 = arith.mulf %cst_73, %227 : f32
    %229 = arith.addf %183, %226 : f32
    %cst_74 = arith.constant 6.000000e-01 : f32
    %230 = arith.mulf %cst_74, %229 : f32
    %231 = arith.addf %228, %230 : f32
    %232 = vector.broadcast %231 : f32 to vector<1x1xf32>
    %c0_75 = arith.constant 0 : index
    %c0_76 = arith.constant 0 : index
    %233 = vector.load %arg4[%c0_75, %c0_76] : memref<1x1xf32, #tpu.memory_space<vmem>>, vector<1x1xf32>
    tpu.vector_store %arg4[%c0_75, %c0_76], %232 {strides = array<i32>} : memref<1x1xf32, #tpu.memory_space<vmem>>, vector<1x1xf32>,
    return
  }
}

</mosaic_0001>

<bundles_post_ra>
// kernel: recommender_forward.1
= control target key start
LH: loop header
LB: loop body
LE: loop exit
PB: predicated region body
PF: predicated region fallthrough
CT: control target
= control target key end

     0   :  { %10 = vsyncpa [#allocation3], 0  ;;  %s2216_s0 = inlined_call_operand.vmem [shape: f32[16,32], index: 0, kind: input, shape index: {}]   ;;  %s2217_s1 = inlined_call_operand.vmem [shape: f32[48,16], index: 1, kind: input, shape index: {}]   ;;  %s2218_s2 = inlined_call_operand.hbm [shape: f32[264,192], index: 2, kind: input, shape index: {}]   ;;  %s2219_s3 = inlined_call_operand.hbm [shape: f32[16,64], index: 3, kind: output, shape index: {0}]   ;;  %s2220_s4 = inlined_call_operand.hbm [shape: f32[1,1], index: 4, kind: output, shape index: {1}]  }
   0x1   :  { %11 = vsyncpa [#allocation4], 0 }
   0x2   :  { %12 = vsyncpa [#allocation7], 0  ;;  %s1941_s15 = smov [#allocation2]   ;;  %s1869_s19 = scalar_lea.hbm %s2218_s2, 8448 }
   0x3   :  { %s22_s16 = sshll.u32 %s1941_s15, 4  ;;  %p1870_p0 = scmp.ne.s32.totalorder %s2218_s2, %s1869_s19  ;;  %s23_s16 = int_to_ptr.vmem [resolvable:$true] %s22_s16 }
   0x4   :  { %p1873_p1 = scmp.lt.u32.totalorder %s1869_s19, %s2218_s2 }
   0x6   :  { %p1875_p2 = pnand %p1873_p1, %p1870_p0 }
   0x8   :  { %1878 = shalt.err (!%p1875_p2)
}
   0x9   :  { %s1879_s24 = scalar_lea.vmem %s23_s16, 8448  ;;  %p1884_p4 = scmp.lt.s32.totalorder %s23_s16, %s23_s16 }
   0xa   :  { %p1880_p3 = scmp.ne.s32.totalorder %s23_s16, %s1879_s24  ;;  %p1885_p5 = scmp.lt.s32.totalorder %s1879_s24, %s1879_s24 }
   0xc   :  { %p1886_p6 = por %p1885_p5, %p1884_p4 }
   0xe   :  { %p1887_p7 = pnand %p1886_p6, %p1880_p3 }
  0x10   :  { %1890 = shalt.err (!%p1887_p7)
}
  0x11   :  { %s1942_s25 = smov 256   ;;  %s1943_s26 = smov 16  }
  0x12   :  { %28 = dma.hbm_to_vmem [thread:$0]  %s2218_s2, 8448, %s23_s16, [#allocation3], %s1942_s25, %s1942_s25, %s1943_s26  }
  0x13   :  { %1935 = dma.done.wait [#allocation3], 8448  }
  0x14   :  { %1936 = vsyncadd [#allocation3], 4294958848  ;;  %vm49_vm0 = vcmask 261120   ;;  %v44_v0 = vld [vmem:[#allocation2] sm:$0xff]  ;;  %v45_v1 = vld [vmem:[#allocation2 + $0x10] sm:$0xff]  ;;  %vm139_vm1 = vcmask 130048   ;;  %v40_v33 = vlaneseq }
  0x15   :  { %v46_v2 = vld [vmem:[#allocation2 + $0x20] sm:$0xff]  ;;  %v1671_v3 = vpack.c.bf16 %v45_v1, %v44_v0  ;;  %v47_v4 = vld [vmem:[#allocation2 + $0x30] sm:$0xff]  ;;  %v33_v7 = vld [vmem:[%s2216_s0 + $0x8] sm:$0xff]  ;;  %s1944_s8 = smov 64   ;;  %vm272_vm4 = vcmask 523264   ;;  %vm610_vm5 = vcmask 785408  }
  0x16   :  { %v32_v5 = vld [vmem:[%s2216_s0] sm:$0xff]  ;;  %v1675_v6 = vpack.c.bf16 %v47_v4, %v46_v2  ;;  %v2007_v16 = vld [vmem:[%s2217_s1 + $0x8] sm:$0xff]  ;;  %v2012_v17 = vld [vmem:[%s2217_s1 + $0x10] sm:$0xff]  ;;  %v2031_v36 = vand.u32 127, %v40_v33  ;;  %s1947_s18 = smov 112   ;;  %s1948_s19 = smov 96  }
  0x17   :  { %1565 = vmatprep.mubr.msk.f32.mxu0 %vm49_vm0, %v32_v5  ;;  %1672 = vmatprep.subr.bf16.mxu0 %v1671_v3  ;;  %v34_v8 = vld [vmem:[%s2217_s1] sm:$0xff]  ;;  %v37_v18 = vld [vmem:[%s2217_s1 + $0x18] sm:$0xff]  ;;  %v39_v20 = vld [vmem:[%s2217_s1 + $0x28] sm:$0xff]  ;;  %vm837_vm8 = vcmask 7168   ;;  %s1949_s20 = smov [#allocation5]  }
  0x18   :  { %1674 = vmatpush3.bf16.msra.mxu0 %v1671_v3  ;;  %1572 = vmatprep.mubr.msk.f32.mxu1 %vm139_vm1, %v34_v8  ;;  %v38_v19 = vld [vmem:[%s2217_s1 + $0x20] sm:$0xff]  ;;  %v264_v22 = vld [vmem:[#allocation2 + $0x50] sm:$0xff]  ;;  %vm43_vm2 = vcmp.lt.s32.totalorder %v2031_v36, 32  ;;  %vm42_vm3 = vcmp.lt.s32.totalorder %v2031_v36, 16  ;;  %v468_v59 = vld [vmem:[#allocation2 + $0xc8] sm:$0xff]  ;;  %s1946_s1 = smov 32  }
  0x19   :  { %1676 = vmatprep.subr.bf16.mxu0 %v1675_v6  ;;  %v263_v21 = vld [vmem:[#allocation2 + $0x40] sm:$0xff]  ;;  %v266_v25 = vld [vmem:[#allocation2 + $0x70] sm:$0xff]  ;;  %v470_v60 = vld [vmem:[#allocation2 + $0xd8] sm:$0xff]  ;;  %s1429_s21 = sshll.u32 %s1949_s20, 4  ;;  %s1430_s21 = int_to_ptr.vmem [resolvable:$true] %s1429_s21 }
  0x1a   :  { %v1683_v23 = vpack.c.bf16 %v264_v22, %v263_v21  ;;  %v265_v24 = vld [vmem:[#allocation2 + $0x60] sm:$0xff]  ;;  %v268_v28 = vld [vmem:[#allocation2 + $0x90] sm:$0xff]  ;;  %v1703_v61 = vpack.c.bf16 %v470_v60, %v468_v59  ;;  %v472_v1 = vld [vmem:[#allocation2 + $0xe8] sm:$0xff]  ;;  %s1891_s22 = scalar_lea.vmem %s1430_s21, 256  ;;  %p1896_p9 = scmp.lt.s32.totalorder %s1430_s21, %s1430_s21 }
  0x1b   :  { %v1687_v26 = vpack.c.bf16 %v266_v25, %v265_v24  ;;  %v267_v27 = vld [vmem:[#allocation2 + $0x80] sm:$0xff]  ;;  %v270_v31 = vld [vmem:[#allocation2 + $0xb0] sm:$0xff]  ;;  %v474_v2 = vld [vmem:[#allocation2 + $0xf8] sm:$0xff]  ;;  %p1892_p8 = scmp.ne.s32.totalorder %s1430_s21, %s1891_s22  ;;  %p1897_p10 = scmp.lt.s32.totalorder %s1891_s22, %s1891_s22 }
  0x1c   :  { %1678 = vmatpush3.bf16.msra.mxu0 %v1675_v6  ;;  %v1691_v29 = vpack.c.bf16 %v268_v28, %v267_v27  ;;  %v269_v30 = vld [vmem:[#allocation2 + $0xa0] sm:$0xff]  ;;  %v469_v63 = vld [vmem:[#allocation2 + $0xd0] sm:$0xff]  ;;  %v1707_v3 = vpack.c.bf16 %v474_v2, %v472_v1  ;;  %vm2128_vm6 = vmpackc.low %vm139_vm1, %vm139_vm1 }
  0x1d   :  { %v1695_v32 = vpack.c.bf16 %v270_v31, %v269_v30  ;;  %v48_v42 = vld [vmem:[#allocation2 + $0x200] ss:$0 sm:$0xff]  ;;  %v473_v5 = vld [vmem:[#allocation2 + $0xf0] sm:$0xff]  ;;  %vm1756_vm7 = vmpackc.low %vm49_vm0, %vm49_vm0  ;;  %p1898_p11 = por %p1897_p10, %p1896_p9 }
  0x1e   :  { %v467_v62 = vld [vmem:[#allocation2 + $0xc0] sm:$0xff]  ;;  %v598_v21 = vld [vmem:[#allocation2 + $0x150] sm:$0xff] }
  0x1f   :  { %1566 = vmatmul.mubr.msk.f32.vlgmr.msra.gmra.mrb[0].mxu0 %vm49_vm0, %v33_v7  ;;  %v1705_v0 = vpack.c.bf16 %v469_v63, %v467_v62  ;;  %v471_v4 = vld [vmem:[#allocation2 + $0xe0] sm:$0xff]  ;;  %v476_v7 = vld [vmem:[#allocation2 + $0x108] sm:$0xff]  ;;  %v600_v24 = vld [vmem:[#allocation2 + $0x170] sm:$0xff]  ;;  %p1899_p12 = pnand %p1898_p11, %p1892_p8 }
  0x20   :  { %1604 = vmatprep.mubr.msk.f32.mxu0 %vm139_vm1, %v34_v8  ;;  %v1709_v6 = vpack.c.bf16 %v473_v5, %v471_v4  ;;  %v478_v8 = vld [vmem:[#allocation2 + $0x118] sm:$0xff]  ;;  %v599_v22 = vld [vmem:[#allocation2 + $0x160] sm:$0xff]  ;;  %v602_v27 = vld [vmem:[#allocation2 + $0x190] sm:$0xff] }
  0x21   :  { %v1723_v25 = vpack.c.bf16 %v600_v24, %v599_v22  ;;  %v604_v30 = vld [vmem:[#allocation2 + $0x1b0] sm:$0xff]  ;;  %v607_v36 = vld [vmem:[#allocation2 + $0x1e0] sm:$0xff] }
  0xf2   :  { %v1567_v9 = vpop.f32.mrb[0].mxu0 }
  0xf3   :  { %v122_v10 = vpop.f32.mrb[1].mxu0 }
  0xf4   :  { %v1795_v11 = vpack.i.bf16 %v1567_v9, %v122_v10 }
  0xf6   :  { %1796 = vrot.lane.b32.xlu0 %v1795_v11, %s1944_s8  ;;  %v477_v11 = vld [vmem:[#allocation2 + $0x110] sm:$0xff] }
 0x168   :  { %v1797_v12 = vpop.permute.xlu0 %1796 }
 0x169   :  { %v1799_v13 = vunpack.i.h.bf16 %v1797_v12  ;;  %v1798_v14 = vunpack.i.l.bf16 %v1797_v12 }
 0x16b   :  { %v1679_v15 = vpack.c.bf16 %v1799_v13, %v1798_v14  ;;  %v480_v13 = vld [vmem:[#allocation2 + $0x128] sm:$0xff]  ;;  %v482_v14 = vld [vmem:[#allocation2 + $0x138] sm:$0xff] }
 0x16d   :  { %1680 = vmatprep.subr.bf16.mxu1 %v1679_v15 }
 0x16e   :  { %1682 = vmatpush3.bf16.msra.mxu1 %v1679_v15  ;;  %v1715_v15 = vpack.c.bf16 %v482_v14, %v480_v13  ;;  %v609_v13 = vld [vmem:[#allocation2 + $0x203] ss:$0 sm:$0xff] }
 0x16f   :  { %1684 = vmatprep.subr.bf16.mxu1 %v1683_v23 }
 0x171   :  { %1573 = vmatmul.mubr.msk.f32.vlgmr.msra.gmra.mrb[0].mxu1 %vm139_vm1, %v2007_v16 }
 0x172   :  { %1575 = vmatprep.mubr.msk.f32.mxu1 %vm139_vm1, %v2012_v17  ;;  %1686 = vmatpush3.bf16.msra.mxu1 %v1683_v23 }
 0x173   :  { %1688 = vmatprep.subr.bf16.mxu1 %v1687_v26 }
 0x175   :  { %1576 = vmatmul.mubr.msk.f32.gmra.mrb[2].mxu1 %vm139_vm1, %v37_v18 }
 0x176   :  { %1578 = vmatprep.mubr.msk.f32.mxu1 %vm139_vm1, %v38_v19  ;;  %1690 = vmatpush3.bf16.msra.mxu1 %v1687_v26  ;;  %v601_v26 = vld [vmem:[#allocation2 + $0x180] sm:$0xff] }
 0x177   :  { %1692 = vmatprep.subr.bf16.mxu1 %v1691_v29  ;;  %v1727_v28 = vpack.c.bf16 %v602_v27, %v601_v26 }
 0x179   :  { %1579 = vmatmul.mubr.msk.f32.gmra.mrb[4].mxu1 %vm139_vm1, %v39_v20 }
 0x17a   :  { %1694 = vmatpush3.bf16.msra.mxu1 %v1691_v29  ;;  %v603_v29 = vld [vmem:[#allocation2 + $0x1a0] sm:$0xff] }
 0x17b   :  { %1696 = vmatprep.subr.bf16.mxu1 %v1695_v32  ;;  %v1731_v31 = vpack.c.bf16 %v604_v30, %v603_v29 }
 0x17e   :  { %1698 = vmatpush3.bf16.msra.mxu1 %v1695_v32 }
 0x244   :  { %v1574_v34 = vpop.f32.mrb[0].mxu1 }
 0x245   :  { %v224_v35 = vpop.f32.mrb[1].mxu1 }
 0x248   :  { %v1577_v37 = vpop.f32.mrb[2].mxu1 }
 0x249   :  { %v234_v38 = vpop.f32.mrb[3].mxu1 }
 0x24c   :  { %v1580_v39 = vpop.f32.mrb[4].mxu1 }
 0x24d   :  { %v254_v40 = vsel %vm43_vm2, %v1577_v37, %v1580_v39  ;;  %v244_v41 = vpop.f32.mrb[5].mxu1 }
 0x24e   :  { %v256_v43 = vsel %vm42_vm3, %v1574_v34, %v254_v40  ;;  %v253_v44 = vsel %vm43_vm2, %v234_v38, %v244_v41  ;;  %v271_v41 = vld [vmem:[#allocation2 + $0x201] ss:$0 sm:$0xff] }
 0x24f   :  { %v258_v45 = vadd.f32 %v1567_v9, %v256_v43  ;;  %v255_v46 = vsel %vm42_vm3, %v224_v35, %v253_v44  ;;  %v1711_v9 = vpack.c.bf16 %v478_v8, %v476_v7 }
 0x250   :  { %v257_v47 = vadd.f32 %v255_v46, %v122_v10  ;;  %v475_v10 = vld [vmem:[#allocation2 + $0x100] sm:$0xff] }
 0x251   :  { %v260_v48 = vadd.f32 %v258_v45, %v48_v42  ;;  %v1713_v12 = vpack.c.bf16 %v477_v11, %v475_v10 }
 0x252   :  { %v259_v49 = vadd.f32 %v257_v47, %v48_v42 }
 0x253   :  { %v262_v51 = vmax.f32 %v260_v48, 0.0 }
 0x254   :  { %v261_v50 = vmax.f32 %v259_v49, 0.0  ;;  %v605_v49 = vld [vmem:[#allocation2 + $0x1c0] sm:$0xff] }
 0x256   :  { %1597 = vmatprep.mubr.msk.f32.mxu1 %vm272_vm4, %v261_v50  ;;  %v606_v50 = vld [vmem:[#allocation2 + $0x1d0] sm:$0xff] }
 0x257   :  { %1598 = vmatmul.mubr.msk.f32.vlgmr.msra.gmra.mrb[6].mxu1 %vm272_vm4, %v262_v51  ;;  %v1735_v51 = vpack.c.bf16 %v606_v50, %v605_v49 }
 0x32a   :  { %v2045_v52 = vpop.f32.mrb[6].mxu1 }
 0x32b   :  { %v2047_v53 = vpop.f32.mrb[7].mxu1 }
 0x32c   :  { %v1800_v54 = vpack.i.bf16 %v2045_v52, %v2047_v53 }
 0x32e   :  { %1801 = vrot.lane.b32.xlu0 %v1800_v54, %s1944_s8 }
 0x3a0   :  { %v1802_v55 = vpop.permute.xlu0 %1801 }
 0x3a1   :  { %v1804_v56 = vunpack.i.h.bf16 %v1802_v55  ;;  %v1803_v57 = vunpack.i.l.bf16 %v1802_v55 }
 0x3a3   :  { %v1699_v58 = vpack.c.bf16 %v1804_v56, %v1803_v57  ;;  %v484_v56 = vld [vmem:[#allocation2 + $0x202] ss:$8 sm:$0x3] }
 0x3a5   :  { %1700 = vmatprep.subr.bf16.mxu0 %v1699_v58 }
 0x3a6   :  { %1702 = vmatpush3.bf16.msra.mxu0 %v1699_v58 }
 0x3a7   :  { %1704 = vmatprep.subr.bf16.mxu0 %v1703_v61 }
 0x3a9   :  { %1605 = vmatmul.mubr.msk.f32.vlgmr.msra.gmra.mrb[2].mxu0 %vm139_vm1, %v2007_v16  ;;  %v479_v16 = vld [vmem:[#allocation2 + $0x120] sm:$0xff] }
 0x3aa   :  { %1607 = vmatprep.mubr.msk.f32.mxu0 %vm139_vm1, %v2012_v17  ;;  %1706 = vmatpush1.bf16.msra.mxu0 %v1705_v0  ;;  %v481_v17 = vld [vmem:[#allocation2 + $0x130] sm:$0xff] }
 0x3ab   :  { %1708 = vmatprep.subr.bf16.mxu0 %v1707_v3 }
 0x3ad   :  { %1608 = vmatmul.mubr.msk.f32.gmra.mrb[4].mxu0 %vm139_vm1, %v37_v18  ;;  %v1717_v18 = vpack.c.bf16 %v481_v17, %v479_v16 }
 0x3ae   :  { %1610 = vmatprep.mubr.msk.f32.mxu0 %vm139_vm1, %v38_v19  ;;  %1710 = vmatpush1.bf16.msra.mxu0 %v1709_v6  ;;  %v1945_v19 = vmov 0.0  }
 0x3af   :  { %1712 = vmatprep.subr.bf16.mxu0 %v1711_v9 }
 0x3b1   :  { %1611 = vmatmul.mubr.msk.f32.gmra.mrb[6].mxu0 %vm139_vm1, %v39_v20  ;;  %v597_v20 = vld [vmem:[#allocation2 + $0x140] sm:$0xff] }
 0x3b2   :  { %1714 = vmatpush1.bf16.msra.mxu0 %v1713_v12  ;;  %566 = vmatprep.mubr.f32.mxu0 %v1945_v19  ;;  %v1719_v23 = vpack.c.bf16 %v598_v21, %v597_v20 }
 0x3b3   :  { %1716 = vmatprep.subr.bf16.mxu0 %v1715_v15 }
 0x3b4   :  { %1720 = vmatprep.subr.bf16.mxu1 %v1719_v23 }
 0x3b5   :  { %1722 = vmatpush3.bf16.msra.mxu1 %v1719_v23 }
 0x3b6   :  { %1718 = vmatpush1.bf16.msra.mxu0 %v1717_v18  ;;  %1724 = vmatprep.subr.bf16.mxu1 %v1723_v25 }
 0x3b9   :  { %1726 = vmatpush3.bf16.msra.mxu1 %v1723_v25 }
 0x3ba   :  { %1728 = vmatprep.subr.bf16.mxu1 %v1727_v28 }
 0x3bd   :  { %1730 = vmatpush3.bf16.msra.mxu1 %v1727_v28 }
 0x3be   :  { %1732 = vmatprep.subr.bf16.mxu1 %v1731_v31 }
 0x3c1   :  { %1734 = vmatpush3.bf16.msra.mxu1 %v1731_v31 }
 0x3c2   :  { %1736 = vmatprep.subr.bf16.mxu1 %v1735_v51 }
 0x3c5   :  { %1738 = vmatpush3.bf16.msra.mxu1 %v1735_v51 }
 0x47c   :  { %v1606_v32 = vpop.f32.mrb[2].mxu0 }
 0x47d   :  { %v428_v34 = vpop.f32.mrb[3].mxu0 }
 0x480   :  { %v1609_v35 = vpop.f32.mrb[4].mxu0 }
 0x481   :  { %v438_v37 = vpop.f32.mrb[5].mxu0 }
 0x484   :  { %v1612_v38 = vpop.f32.mrb[6].mxu0 }
 0x485   :  { %v458_v39 = vsel %vm43_vm2, %v1609_v35, %v1612_v38  ;;  %v448_v40 = vpop.f32.mrb[7].mxu0 }
 0x486   :  { %v460_v42 = vsel %vm42_vm3, %v1606_v32, %v458_v39  ;;  %v457_v43 = vsel %vm43_vm2, %v438_v37, %v448_v40 }
 0x487   :  { %v462_v44 = vadd.f32 %v2045_v52, %v460_v42  ;;  %v459_v45 = vsel %vm42_vm3, %v428_v34, %v457_v43  ;;  %v608_v52 = vld [vmem:[#allocation2 + $0x1f0] sm:$0xff] }
 0x488   :  { %v461_v46 = vadd.f32 %v459_v45, %v2047_v53  ;;  %v1739_v54 = vpack.c.bf16 %v608_v52, %v607_v36  ;;  %v487_v53 = vshrl.u32 %v40_v33, 7 }
 0x489   :  { %v464_v47 = vadd.f32 %v462_v44, %v271_v41 }
 0x48a   :  { %v463_v48 = vadd.f32 %v461_v46, %v271_v41  ;;  %1740 = vmatprep.subr.bf16.mxu1 %v1739_v54  ;;  %v488_v55 = vsub.s32 0, %v487_v53  ;;  %v492_v57 = vsub.s32 1, %v487_v53 }
 0x48b   :  { %466 = vst.msk [vmem:[#allocation5 + $0x8] sm:$0xff] %vm272_vm4, %v464_v47  ;;  %1742 = vmatpush3.bf16.msra.mxu1 %v1739_v54 }
 0x48c   :  { %465 = vst.msk [vmem:[#allocation5] sm:$0xff] %vm272_vm4, %v463_v48  ;;  %1471 = vmatmul.mubr.msk.f32.vlgmr.msra.gmra.mrb[8].mxu0 %vm272_vm4, %v463_v48  ;;  %v489_v58 = vrot.slane %v484_v56, %v488_v55  ;;  %v493_v59 = vrot.slane %v484_v56, %v492_v57 }
 0x48d   :  { %572 = vmatprep.mubr.f32.mxu0 %v1945_v19 }
 0x490   :  { %1472 = vmatmul.mubr.msk.f32.gmra.mrb[10].mxu0 %vm272_vm4, %v464_v47 }
 0x55f   :  { %v568_v60 = vpop.f32.mrb[8].mxu0 }
 0x560   :  { %v569_v61 = vadd.f32 %v568_v60, %v489_v58  ;;  %v570_v62 = vpop.f32.mrb[9].mxu0 }
 0x561   :  { %v571_v0 = vadd.f32 %v570_v62, %v493_v59 }
 0x562   :  { %v579_v63 = vmax.f32 %v569_v61, 0.0 }
 0x563   :  { %v574_v1 = vpop.f32.mrb[10].mxu0  ;;  %v580_v4 = vmax.f32 %v571_v0, 0.0 }
 0x564   :  { %v575_v2 = vadd.f32 %v574_v1, %v489_v58  ;;  %v576_v3 = vpop.f32.mrb[11].mxu0  ;;  %587 = vrot.lane.b32.xlu1 %v579_v63, %s1946_s1  ;;  %1637 = vmatprep.mubr.msk.f32.mxu1 %vm610_vm5, %v579_v63 }
 0x565   :  { %v577_v5 = vadd.f32 %v576_v3, %v493_v59 }
 0x566   :  { %v581_v33 = vmax.f32 %v575_v2, 0.0 }
 0x567   :  { %v582_v6 = vmax.f32 %v577_v5, 0.0 }
 0x568   :  { %591 = vrot.lane.b32.xlu0 %v581_v33, %s1946_s1  ;;  %589 = vrot.lane.b32.xlu1 %v580_v4, %s1946_s1 }
 0x569   :  { %1638 = vmatmul.mubr.msk.f32.vlgmr.msra.gmra.mrb[8].mxu1 %vm610_vm5, %v581_v33 }
 0x56c   :  { %593 = vrot.lane.b32.xlu1 %v582_v6, %s1946_s1 }
 0x5d6   :  { %v588_v7 = vpop.permute.xlu1 %587 }
 0x5da   :  { %v590_v8 = vpop.permute.xlu1 %589  ;;  %v592_v10 = vpop.permute.xlu0 %591 }
 0x5db   :  { %v595_v9 = vsel %vm49_vm0, %v588_v7, %v590_v8 }
 0x5dc   :  { %1640 = vmatprep.mubr.msk.f32.mxu1 %vm610_vm5, %v595_v9 }
 0x5de   :  { %v594_v11 = vpop.permute.xlu1 %593 }
 0x5df   :  { %v596_v12 = vsel %vm49_vm0, %v592_v10, %v594_v11 }
 0x5e0   :  { %1641 = vmatmul.mubr.msk.f32.gmra.mrb[10].mxu1 %vm610_vm5, %v596_v12 }
 0x63c   :  { %v1639_v14 = vpop.f32.mrb[8].mxu1 }
 0x63d   :  { %v2080_v15 = vadd.f32 %v1639_v14, %v609_v13  ;;  %v685_v16 = vpop.f32.mrb[9].mxu1 }
 0x63e   :  { %v2082_v17 = vadd.f32 %v685_v16, %v609_v13 }
 0x63f   :  { %v867_v18 = vmul.f32 %v2080_v15, %v2080_v15 }
 0x640   :  { %v704_v19 = vmul.f32 %v2082_v17, %v2082_v17 }
 0x641   :  { %871 = vrot.lane.b32.xlu0 %v867_v18, %s1947_s18 }
 0x642   :  { %v706_v40 = vsel %vm139_vm1, %v704_v19, 0.0 }
 0x645   :  { %1054 = vrot.lane.b32.xlu0 %v704_v19, %s1948_s19 }
 0x649   :  { %1235 = vrot.lane.b32.xlu0 %v867_v18, %s1944_s8 }
 0x6b3   :  { %v872_v20 = vpop.permute.xlu0 %871  ;;  %v1642_v21 = vpop.f32.mrb[10].mxu1 }
 0x6b4   :  { %v2091_v22 = vadd.f32 %v1642_v21, %v609_v13  ;;  %v695_v23 = vpop.f32.mrb[11].mxu1  ;;  %v877_v24 = vsel %vm139_vm1, %v872_v20, 0.0 }
 0x6b5   :  { %878 = vadd.xlane.f32.xlu0 %v877_v24  ;;  %v2094_v25 = vadd.f32 %v695_v23, %v609_v13 }
 0x6b6   :  { %v868_v26 = vmul.f32 %v2091_v22, %v2091_v22 }
 0x6b7   :  { %v1055_v27 = vpop.permute.xlu0 %1054  ;;  %v705_v29 = vmul.f32 %v2094_v25, %v2094_v25 }
 0x6b8   :  { %873 = vrot.lane.b32.xlu1 %v868_v26, %s1947_s18  ;;  %v1060_v28 = vsel %vm49_vm0, %v1055_v27, 0.0 }
 0x6b9   :  { %1061 = vadd.xlane.f32.xlu0 %v1060_v28  ;;  %v709_v41 = vsel %vm139_vm1, %v705_v29, 0.0 }
 0x6bb   :  { %v1236_v32 = vpop.permute.xlu0 %1235 }
 0x6bc   :  { %1056 = vrot.lane.b32.xlu1 %v705_v29, %s1948_s19  ;;  %v1241_v37 = vsel %vm49_vm0, %v1236_v32, 0.0 }
 0x6c0   :  { %1237 = vrot.lane.b32.xlu1 %v868_v26, %s1944_s8 }
 0x72a   :  { %v874_v30 = vpop.permute.xlu1 %873 }
 0x72b   :  { %v880_v31 = vsel %vm139_vm1, %v874_v30, 0.0 }
 0x72c   :  { %881 = vadd.xlane.f32.xlu1 %v880_v31 }
 0x72e   :  { %v1057_v34 = vpop.permute.xlu1 %1056 }
 0x72f   :  { %v1063_v35 = vsel %vm49_vm0, %v1057_v34, 0.0 }
 0x730   :  { %1064 = vadd.xlane.f32.xlu0 %v1063_v35  ;;  %1242 = vadd.xlane.f32.xlu1 %v1241_v37 }
 0x732   :  { %v1238_v38 = vpop.permute.xlu1 %1237 }
 0x733   :  { %v1244_v39 = vsel %vm49_vm0, %v1238_v38, 0.0 }
 0x734   :  { %1245 = vadd.xlane.f32.xlu0 %v1244_v39  ;;  %707 = vadd.xlane.f32.xlu1 %v706_v40 }
 0x738   :  { %710 = vadd.xlane.f32.xlu0 %v709_v41 }
 0x742   :  { %v879_v42 = vpop.xlane.xlu0 %878 }
 0x743   :  { %v883_v43 = vmax.f32 %v879_v42, 1e-24 }
 0x745   :  { %1805 = vrsqrt.f32 %v883_v43 }
 0x746   :  { %v1062_v44 = vpop.xlane.xlu0 %1061 }
 0x747   :  { %v1066_v45 = vmax.f32 %v1062_v44, 1e-24 }
 0x749   :  { %1807 = vrsqrt.f32 %v1066_v45 }
 0x74f   :  { %v1806_v46 = vpop.eup %1805 }
 0x750   :  { %v887_v47 = vmul.f32 %v1806_v46, %v2080_v15 }
 0x752   :  { %891 = vrot.lane.b32.xlu1 %v887_v47, %s1947_s18  ;;  %v980_v33 = vmul.f32 %v887_v47, %v887_v47 }
 0x753   :  { %v1808_v48 = vpop.eup %1807 }
 0x754   :  { %v1070_v49 = vmul.f32 %v1808_v48, %v2082_v17 }
 0x756   :  { %1074 = vrot.lane.b32.xlu1 %v1070_v49, %s1948_s19  ;;  %v1163_v9 = vmul.f32 %v1070_v49, %v1070_v49 }
 0x7b9   :  { %v882_v50 = vpop.xlane.xlu1 %881 }
 0x7ba   :  { %v884_v51 = vmax.f32 %v882_v50, 1e-24 }
 0x7bc   :  { %1809 = vrsqrt.f32 %v884_v51 }
 0x7bd   :  { %v1243_v36 = vpop.xlane.xlu1 %1242  ;;  %v1065_v52 = vpop.xlane.xlu0 %1064 }
 0x7be   :  { %v1247_v54 = vmax.f32 %v1243_v36, 1e-24  ;;  %v1067_v53 = vmax.f32 %v1065_v52, 1e-24 }
 0x7c0   :  { %1811 = vrsqrt.f32 %v1247_v54 }
 0x7c1   :  { %1813 = vrsqrt.f32 %v1067_v53  ;;  %v1246_v55 = vpop.xlane.xlu0 %1245  ;;  %v708_v56 = vpop.xlane.xlu1 %707 }
 0x7c2   :  { %v1248_v57 = vmax.f32 %v1246_v55, 1e-24  ;;  %v712_v58 = vmax.f32 %v708_v56, 1e-24 }
 0x7c4   :  { %1815 = vrsqrt.f32 %v1248_v57 }
 0x7c5   :  { %1817 = vrsqrt.f32 %v712_v58  ;;  %v711_v59 = vpop.xlane.xlu0 %710  ;;  %v892_v18 = vpop.permute.xlu1 %891 }
 0x7c6   :  { %v1810_v60 = vpop.eup %1809  ;;  %v713_v61 = vmax.f32 %v711_v59, 1e-24 }
 0x7c7   :  { %v888_v62 = vmul.f32 %v1810_v60, %v2091_v22 }
 0x7c8   :  { %1819 = vrsqrt.f32 %v713_v61 }
 0x7c9   :  { %893 = vrot.lane.b32.xlu0 %v888_v62, %s1947_s18  ;;  %v981_v10 = vmul.f32 %v888_v62, %v888_v62  ;;  %v1002_v16 = vmul.f32 %v888_v62, %v887_v47  ;;  %v1075_v26 = vpop.permute.xlu1 %1074 }
 0x7ca   :  { %v1812_v63 = vpop.eup %1811 }
 0x7cb   :  { %v1814_v0 = vpop.eup %1813  ;;  %v1251_v1 = vmul.f32 %v1812_v63, %v2080_v15 }
 0x7cc   :  { %v1071_v2 = vmul.f32 %v1814_v0, %v2094_v25 }
 0x7cd   :  { %1255 = vrot.lane.b32.xlu0 %v1251_v1, %s1944_s8  ;;  %v1344_v14 = vmul.f32 %v1251_v1, %v1251_v1 }
 0x7ce   :  { %v1816_v3 = vpop.eup %1815  ;;  %1076 = vrot.lane.b32.xlu1 %v1071_v2, %s1948_s19  ;;  %v1164_v15 = vmul.f32 %v1071_v2, %v1071_v2  ;;  %v1185_v20 = vmul.f32 %v1071_v2, %v1070_v49 }
 0x7cf   :  { %v1818_v4 = vpop.eup %1817  ;;  %v1252_v5 = vmul.f32 %v1816_v3, %v2091_v22 }
 0x7d0   :  { %v716_v6 = vmul.f32 %v1818_v4, %v2082_v17 }
 0x7d1   :  { %984 = vrot.lane.b32.xlu0 %v980_v33, %s1947_s18  ;;  %v1345_v17 = vmul.f32 %v1252_v5, %v1252_v5  ;;  %v1366_v19 = vmul.f32 %v1252_v5, %v1251_v1 }
 0x7d2   :  { %v1820_v7 = vpop.eup %1819  ;;  %1257 = vrot.lane.b32.xlu1 %v1252_v5, %s1944_s8  ;;  %1647 = vmatprep.mubr.msk.f32.mxu0 %vm139_vm1, %v716_v6  ;;  %v806_v23 = vmul.f32 %v716_v6, %v716_v6 }
 0x7d3   :  { %v717_v8 = vmul.f32 %v1820_v7, %v2094_v25 }
 0x7d4   :  { %v808_v24 = vsel %vm139_vm1, %v806_v23, 0.0 }
 0x7d5   :  { %1167 = vrot.lane.b32.xlu0 %v1163_v9, %s1948_s19  ;;  %v1743_v12 = vpack.c.bf16 %v717_v8, %v716_v6  ;;  %v2133_v13 = vmul.f32 %v717_v8, %v716_v6  ;;  %v807_v21 = vmul.f32 %v717_v8, %v717_v8 }
 0x7d6   :  { %986 = vrot.lane.b32.xlu1 %v981_v10, %s1947_s18 }
 0x7d7   :  { %1745 = vmatprep.subr.msk.bf16.mxu0 %vm2128_vm6, %v1743_v12  ;;  %v811_v22 = vsel %vm139_vm1, %v807_v21, 0.0 }
 0x7d8   :  { %1748 = vmatpush3.bf16.xpose.msk.msra.mxu0 %vm2128_vm6, %v1743_v12 }
 0x7d9   :  { %1348 = vrot.lane.b32.xlu0 %v1344_v14, %s1944_s8 }
 0x7da   :  { %1169 = vrot.lane.b32.xlu1 %v1164_v15, %s1948_s19 }
 0x7dd   :  { %1004 = vrot.lane.b32.xlu0 %v1002_v16, %s1947_s18 }
 0x7de   :  { %1350 = vrot.lane.b32.xlu1 %v1345_v17, %s1944_s8 }
 0x7df   :  { %1648 = vmatmul.mubr.msk.f32.vlgmr.msra.gmra.mrb[12].mxu0 %vm139_vm1, %v717_v8 }
 0x7e0   :  { %1654 = vmatprep.mubr.msk.f32.mxu0 %vm139_vm1, %v892_v18 }
 0x7e1   :  { %1368 = vrot.lane.b32.xlu0 %v1366_v19, %s1944_s8 }
 0x7e2   :  { %1187 = vrot.lane.b32.xlu1 %v1185_v20, %s1948_s19 }
 0x800   :  { %812 = vadd.xlane.f32.xlu0 %v811_v22 }
 0x806   :  { %809 = vadd.xlane.f32.xlu1 %v808_v24 }
 0x83b   :  { %v894_v25 = vpop.permute.xlu0 %893 }
 0x83c   :  { %v1749_v27 = vpack.c.bf16 %v894_v25, %v892_v18 }
 0x83e   :  { %1751 = vmatprep.subr.msk.bf16.mxu0 %vm2128_vm6, %v1749_v27 }
 0x83f   :  { %v1256_v28 = vpop.permute.xlu0 %1255  ;;  %1754 = vmatpush3.bf16.xpose.msk.msra.mxu0 %vm2128_vm6, %v1749_v27  ;;  %v821_v27 = vsel %vm139_vm1, %v2133_v13, 0.0 }
 0x840   :  { %v1077_v29 = vpop.permute.xlu1 %1076  ;;  %1668 = vmatprep.mubr.msk.f32.mxu1 %vm49_vm0, %v1256_v28 }
 0x841   :  { %v1755_v30 = vpack.c.bf16 %v1077_v29, %v1075_v26 }
 0x843   :  { %1757 = vmatprep.subr.msk.bf16.mxu0 %vm1756_vm7, %v1755_v30  ;;  %v985_v31 = vpop.permute.xlu0 %984 }
 0x844   :  { %v1258_v32 = vpop.permute.xlu1 %1257  ;;  %v990_v34 = vsel %vm139_vm1, %v985_v31, 0.0 }
 0x845   :  { %v1761_v35 = vpack.c.bf16 %v1258_v32, %v1256_v28  ;;  %991 = vadd.xlane.f32.xlu0 %v990_v34 }
 0x846   :  { %1655 = vmatmul.mubr.msk.f32.vlgmr.msra.gmra.mrb[14].mxu0 %vm139_vm1, %v894_v25 }
 0x847   :  { %1763 = vmatprep.subr.msk.bf16.mxu1 %vm1756_vm7, %v1761_v35  ;;  %v1168_v37 = vpop.permute.xlu0 %1167  ;;  %1760 = vmatpush3.bf16.xpose.msk.msra.mxu0 %vm1756_vm7, %v1755_v30 }
 0x848   :  { %1661 = vmatprep.mubr.msk.f32.mxu0 %vm49_vm0, %v1075_v26  ;;  %1766 = vmatpush3.bf16.xpose.msk.msra.mxu1 %vm1756_vm7, %v1761_v35  ;;  %v987_v38 = vpop.permute.xlu1 %986  ;;  %v1173_v39 = vsel %vm49_vm0, %v1168_v37, 0.0 }
 0x849   :  { %1174 = vadd.xlane.f32.xlu0 %v1173_v39  ;;  %v993_v40 = vsel %vm139_vm1, %v987_v38, 0.0 }
 0x84a   :  { %994 = vadd.xlane.f32.xlu1 %v993_v40 }
 0x84b   :  { %v1349_v41 = vpop.permute.xlu0 %1348 }
 0x84c   :  { %v1170_v42 = vpop.permute.xlu1 %1169  ;;  %v1354_v43 = vsel %vm49_vm0, %v1349_v41, 0.0 }
 0x84d   :  { %1355 = vadd.xlane.f32.xlu0 %v1354_v43  ;;  %v1176_v46 = vsel %vm49_vm0, %v1170_v42, 0.0 }
 0x84e   :  { %1662 = vmatmul.mubr.msk.f32.vlgmr.msra.gmra.mrb[16].mxu0 %vm49_vm0, %v1077_v29 }
 0x84f   :  { %1669 = vmatmul.mubr.msk.f32.vlgmr.msra.gmra.mrb[12].mxu1 %vm49_vm0, %v1258_v32  ;;  %v1005_v16 = vpop.permute.xlu0 %1004 }
 0x850   :  { %v1351_v44 = vpop.permute.xlu1 %1350  ;;  %v1007_v25 = vsel %vm139_vm1, %v1005_v16, 0.0 }
 0x851   :  { %v1357_v45 = vsel %vm49_vm0, %v1351_v44, 0.0 }
 0x852   :  { %1358 = vadd.xlane.f32.xlu1 %v1357_v45 }
 0x853   :  { %v1369_v22 = vpop.permute.xlu0 %1368 }
 0x854   :  { %v1188_v24 = vpop.permute.xlu1 %1187  ;;  %v1371_v29 = vsel %vm49_vm0, %v1369_v22, 0.0 }
 0x855   :  { %v1190_v32 = vsel %vm49_vm0, %v1188_v24, 0.0 }
 0x856   :  { %1177 = vadd.xlane.f32.xlu1 %v1176_v46 }
 0x88d   :  { %v813_v26 = vpop.xlane.xlu0 %812 }
 0x88e   :  { %v815_v30 = vmul.f32 1.6666666, %v813_v26 }
 0x890   :  { %v818_v35 = vmul.f32 1.442695, %v815_v30 }
 0x893   :  { %v810_v28 = vpop.xlane.xlu1 %809 }
 0x894   :  { %v814_v31 = vmul.f32 1.6666666, %v810_v28 }
 0x896   :  { %v816_v38 = vmul.f32 1.442695, %v814_v31 }
 0x8b2   :  { %v1649_v47 = vpop.f32.mrb[12].mxu0 }
 0x8b3   :  { %v801_v48 = vmul.f32 1.6666666, %v1649_v47  ;;  %v790_v49 = vpop.f32.mrb[13].mxu0 }
 0x8b4   :  { %v800_v50 = vmul.f32 1.6666666, %v790_v49 }
 0x8b5   :  { %v804_v51 = vmul.f32 1.442695, %v801_v48 }
 0x8b6   :  { %v802_v36 = vmul.f32 1.442695, %v800_v50 }
 0x8b7   :  { %1821 = vpow2.f32 %v804_v51 }
 0x8b8   :  { %1823 = vpow2.f32 %v802_v36 }
 0x8c1   :  { %v1822_v52 = vpop.eup %1821 }
 0x8c2   :  { %v1824_v54 = vpop.eup %1823  ;;  %v828_v53 = vsel %vm139_vm1, %v1822_v52, 0.0 }
 0x8c3   :  { %829 = vadd.xlane.f32.xlu1 %v828_v53  ;;  %v825_v55 = vsel %vm139_vm1, %v1824_v54, 0.0 }
 0x8c4   :  { %826 = vadd.xlane.f32.xlu0 %v825_v55 }
 0x8d2   :  { %v992_v34 = vpop.xlane.xlu0 %991 }
 0x8d3   :  { %v996_v55 = vmul.f32 1.6666666, %v992_v34 }
 0x8d6   :  { %v1175_v40 = vpop.xlane.xlu0 %1174 }
 0x8d7   :  { %v995_v37 = vpop.xlane.xlu1 %994 }
 0x8d8   :  { %v997_v53 = vmul.f32 1.6666666, %v995_v37 }
 0x8da   :  { %v1356_v13 = vpop.xlane.xlu0 %1355 }
 0x8df   :  { %v1359_v39 = vpop.xlane.xlu1 %1358 }
 0x8e3   :  { %v1178_v41 = vpop.xlane.xlu1 %1177 }
 0x919   :  { %v1656_v56 = vpop.f32.mrb[14].mxu0 }
 0x91a   :  { %v975_v57 = vmul.f32 1.6666666, %v1656_v56  ;;  %v965_v58 = vpop.f32.mrb[15].mxu0  ;;  %v1000_v56 = vmul.f32 1.442695, %v997_v53 }
 0x91b   :  { %v974_v59 = vmul.f32 1.6666666, %v965_v58  ;;  %v1180_v58 = vmul.f32 1.6666666, %v1178_v41 }
 0x91c   :  { %v978_v60 = vmul.f32 1.442695, %v975_v57  ;;  %v998_v57 = vmul.f32 1.442695, %v996_v55 }
 0x91d   :  { %v976_v61 = vmul.f32 1.442695, %v974_v59  ;;  %v1179_v59 = vmul.f32 1.6666666, %v1175_v40 }
 0x91e   :  { %1825 = vpow2.f32 %v978_v60  ;;  %v1360_v60 = vmul.f32 1.6666666, %v1356_v13 }
 0x91f   :  { %1827 = vpow2.f32 %v976_v61  ;;  %v1361_v61 = vmul.f32 1.6666666, %v1359_v39 }
 0x921   :  { %v1663_v62 = vpop.f32.mrb[16].mxu0 }
 0x922   :  { %v1158_v63 = vmul.f32 1.6666666, %v1663_v62  ;;  %v1670_v0 = vpop.f32.mrb[12].mxu1  ;;  %v1148_v1 = vpop.f32.mrb[17].mxu0  ;;  %v1183_v62 = vmul.f32 1.442695, %v1180_v58 }
 0x923   :  { %v1339_v2 = vmul.f32 1.6666666, %v1670_v0  ;;  %v1157_v3 = vmul.f32 1.6666666, %v1148_v1  ;;  %v1329_v4 = vpop.f32.mrb[13].mxu1 }
 0x924   :  { %v1161_v33 = vmul.f32 1.442695, %v1158_v63  ;;  %v1338_v5 = vmul.f32 1.6666666, %v1329_v4  ;;  %v1181_v63 = vmul.f32 1.442695, %v1179_v59 }
 0x925   :  { %v1342_v6 = vmul.f32 1.442695, %v1339_v2  ;;  %v1159_v7 = vmul.f32 1.442695, %v1157_v3  ;;  %v1362_v0 = vmul.f32 1.442695, %v1360_v60 }
 0x926   :  { %1829 = vpow2.f32 %v1161_v33  ;;  %v1340_v8 = vmul.f32 1.442695, %v1338_v5  ;;  %v1364_v1 = vmul.f32 1.442695, %v1361_v61 }
 0x927   :  { %1831 = vpow2.f32 %v1342_v6 }
 0x928   :  { %v1826_v9 = vpop.eup %1825  ;;  %1833 = vpow2.f32 %v1159_v7 }
 0x929   :  { %v1828_v10 = vpop.eup %1827  ;;  %v1014_v11 = vsel %vm139_vm1, %v1826_v9, 0.0  ;;  %1835 = vpow2.f32 %v1340_v8 }
 0x92a   :  { %1015 = vadd.xlane.f32.xlu1 %v1014_v11  ;;  %v1011_v12 = vsel %vm139_vm1, %v1828_v10, 0.0  ;;  %1837 = vpow2.f32 %v818_v35 }
 0x92b   :  { %1012 = vadd.xlane.f32.xlu0 %v1011_v12  ;;  %1839 = vpow2.f32 %v816_v38 }
 0x930   :  { %v1830_v14 = vpop.eup %1829 }
 0x931   :  { %v1832_v15 = vpop.eup %1831  ;;  %v1197_v17 = vsel %vm139_vm1, %v1830_v14, 0.0 }
 0x932   :  { %v1834_v18 = vpop.eup %1833  ;;  %1198 = vadd.xlane.f32.xlu1 %v1197_v17  ;;  %v1378_v21 = vsel %vm139_vm1, %v1832_v15, 0.0 }
 0x933   :  { %v1194_v19 = vsel %vm139_vm1, %v1834_v18, 0.0  ;;  %v1836_v20 = vpop.eup %1835 }
 0x934   :  { %1195 = vadd.xlane.f32.xlu0 %v1194_v19  ;;  %v1375_v23 = vsel %vm139_vm1, %v1836_v20, 0.0  ;;  %v1838_v42 = vpop.eup %1837 }
 0x935   :  { %v1840_v44 = vpop.eup %1839 }
 0x936   :  { %1379 = vadd.xlane.f32.xlu1 %v1378_v21 }
 0x938   :  { %1376 = vadd.xlane.f32.xlu0 %v1375_v23 }
 0x93a   :  { %1008 = vadd.xlane.f32.xlu1 %v1007_v25 }
 0x93c   :  { %822 = vadd.xlane.f32.xlu0 %v821_v27 }
 0x93e   :  { %1372 = vadd.xlane.f32.xlu1 %v1371_v29 }
 0x940   :  { %1191 = vadd.xlane.f32.xlu0 %v1190_v32 }
 0x950   :  { %v830_v43 = vpop.xlane.xlu1 %829 }
 0x951   :  { %v832_v45 = vsub.f32 %v830_v43, %v1838_v42  ;;  %v827_v46 = vpop.xlane.xlu0 %826 }
 0x952   :  { %v831_v47 = vsub.f32 %v827_v46, %v1840_v44 }
 0x953   :  { %1841 = vlog2.f32 %v832_v45 }
 0x954   :  { %1843 = vlog2.f32 %v831_v47 }
 0x955   :  { %1845 = vpow2.f32 %v1000_v56 }
 0x956   :  { %1847 = vpow2.f32 %v998_v57 }
 0x957   :  { %1849 = vpow2.f32 %v1183_v62 }
 0x958   :  { %1851 = vpow2.f32 %v1181_v63 }
 0x959   :  { %1853 = vpow2.f32 %v1362_v0 }
 0x95a   :  { %1855 = vpow2.f32 %v1364_v1 }
 0x95d   :  { %v1842_v48 = vpop.eup %1841 }
 0x95e   :  { %v1844_v49 = vpop.eup %1843  ;;  %v836_v50 = vmul.f32 0.6931472, %v1842_v48 }
 0x95f   :  { %v834_v51 = vmul.f32 0.6931472, %v1844_v49  ;;  %v1846_v2 = vpop.eup %1845 }
 0x960   :  { %v839_v36 = vsel %vm837_vm8, %v836_v50, 0.0  ;;  %v1848_v4 = vpop.eup %1847 }
 0x961   :  { %v838_v52 = vsel %vm837_vm8, %v834_v51, 0.0  ;;  %v1850_v7 = vpop.eup %1849 }
 0x962   :  { %v840_v54 = vadd.f32 %v839_v36, %v838_v52  ;;  %v1852_v10 = vpop.eup %1851 }
 0x963   :  { %v1854_v12 = vpop.eup %1853 }
 0x964   :  { %841 = vadd.xlane.f32.xlu0 %v840_v54  ;;  %v1856_v15 = vpop.eup %1855 }
 0x9b7   :  { %v1016_v3 = vpop.xlane.xlu1 %1015 }
 0x9b8   :  { %v1018_v33 = vsub.f32 %v1016_v3, %v1846_v2  ;;  %v1013_v5 = vpop.xlane.xlu0 %1012 }
 0x9b9   :  { %v1017_v6 = vsub.f32 %v1013_v5, %v1848_v4 }
 0x9ba   :  { %1857 = vlog2.f32 %v1018_v33 }
 0x9bb   :  { %1859 = vlog2.f32 %v1017_v6 }
 0x9bf   :  { %v1199_v8 = vpop.xlane.xlu1 %1198 }
 0x9c0   :  { %v1201_v9 = vsub.f32 %v1199_v8, %v1850_v7 }
 0x9c1   :  { %v1196_v11 = vpop.xlane.xlu0 %1195 }
 0x9c2   :  { %1861 = vlog2.f32 %v1201_v9  ;;  %v1200_v14 = vsub.f32 %v1196_v11, %v1852_v10 }
 0x9c3   :  { %v1380_v16 = vpop.xlane.xlu1 %1379 }
 0x9c4   :  { %v1858_v17 = vpop.eup %1857  ;;  %1863 = vlog2.f32 %v1200_v14  ;;  %v1382_v18 = vsub.f32 %v1380_v16, %v1856_v15 }
 0x9c5   :  { %v1860_v19 = vpop.eup %1859  ;;  %v1022_v20 = vmul.f32 0.6931472, %v1858_v17  ;;  %v1377_v21 = vpop.xlane.xlu0 %1376 }
 0x9c6   :  { %v1020_v22 = vmul.f32 0.6931472, %v1860_v19  ;;  %1865 = vlog2.f32 %v1382_v18  ;;  %v1381_v23 = vsub.f32 %v1377_v21, %v1854_v12 }
 0x9c7   :  { %v1024_v24 = vsel %vm837_vm8, %v1022_v20, 0.0  ;;  %v1009_v26 = vpop.xlane.xlu1 %1008 }
 0x9c8   :  { %1867 = vlog2.f32 %v1381_v23  ;;  %v1023_v25 = vsel %vm837_vm8, %v1020_v22, 0.0  ;;  %v1010_v31 = vmul.f32 1.6666666, %v1009_v26 }
 0x9c9   :  { %v823_v27 = vpop.xlane.xlu0 %822  ;;  %v1025_v28 = vadd.f32 %v1024_v24, %v1023_v25 }
 0x9ca   :  { %v824_v29 = vmul.f32 1.6666666, %v823_v27  ;;  %v1038_v13 = vsel %vm837_vm8, %v1010_v31, 0.0 }
 0x9cb   :  { %1026 = vadd.xlane.f32.xlu0 %v1025_v28  ;;  %v1373_v43 = vpop.xlane.xlu1 %1372 }
 0x9cc   :  { %v1862_v30 = vpop.eup %1861  ;;  %v853_v32 = vsel %vm837_vm8, %v824_v29, 0.0  ;;  %v1374_v49 = vmul.f32 1.6666666, %v1373_v43 }
 0x9cd   :  { %v1205_v34 = vmul.f32 0.6931472, %v1862_v30  ;;  %854 = vadd.xlane.f32.xlu1 %v853_v32  ;;  %v1192_v35 = vpop.xlane.xlu0 %1191 }
 0x9ce   :  { %v1864_v37 = vpop.eup %1863  ;;  %v1193_v41 = vmul.f32 1.6666666, %v1192_v35  ;;  %v1402_v52 = vsel %vm837_vm8, %v1374_v49, 0.0 }
 0x9cf   :  { %v1203_v38 = vmul.f32 0.6931472, %v1864_v37  ;;  %v1207_v39 = vsel %vm837_vm8, %v1205_v34, 0.0 }
 0x9d0   :  { %v1866_v40 = vpop.eup %1865  ;;  %v1221_v50 = vsel %vm837_vm8, %v1193_v41, 0.0 }
 0x9d1   :  { %v1386_v42 = vmul.f32 0.6931472, %v1866_v40  ;;  %1039 = vadd.xlane.f32.xlu1 %v1038_v13  ;;  %v1206_v44 = vsel %vm837_vm8, %v1203_v38, 0.0 }
 0x9d2   :  { %v1868_v45 = vpop.eup %1867  ;;  %v1208_v46 = vadd.f32 %v1207_v39, %v1206_v44 }
 0x9d3   :  { %v1384_v47 = vmul.f32 0.6931472, %v1868_v45  ;;  %v1388_v48 = vsel %vm837_vm8, %v1386_v42, 0.0 }
 0x9d4   :  { %1209 = vadd.xlane.f32.xlu0 %v1208_v46 }
 0x9d5   :  { %1222 = vadd.xlane.f32.xlu1 %v1221_v50  ;;  %v1387_v51 = vsel %vm837_vm8, %v1384_v47, 0.0 }
 0x9d6   :  { %v1389_v36 = vadd.f32 %v1388_v48, %v1387_v51 }
 0x9d8   :  { %1390 = vadd.xlane.f32.xlu0 %v1389_v36 }
 0x9d9   :  { %1403 = vadd.xlane.f32.xlu1 %v1402_v52 }
 0x9f1   :  { %v842_v54 = vpop.xlane.xlu0 %841 }
 0x9f2   :  { %v843_v53 = vrot.slane %v842_v54, 4 }
 0x9f4   :  { %v844_v55 = vadd.f32 %v843_v53, %v842_v54 }
 0x9f6   :  { %v845_v56 = vrot.slane %v844_v55, 2 }
 0x9f8   :  { %v846_v57 = vadd.f32 %v845_v56, %v844_v55 }
 0x9fa   :  { %v847_v58 = vrot.slane %v846_v57, 1 }
 0x9fc   :  { %v848_v59 = vadd.f32 %v847_v58, %v846_v57 }
 0x9fe   :  { %1767 = vpush %v848_v59 }
 0x9ff   :  { %1902 = shalt.err (!%p1899_p12)
}
 0xa00   :  { %s1903_s25 = scalar_lea.hbm %s2219_s3, 256 }
 0xa01   :  { %p1904_p13 = scmp.ne.s32.totalorder %s2219_s3, %s1903_s25  ;;  %p1907_p0 = scmp.lt.u32.totalorder %s1903_s25, %s2219_s3 }
 0xa03   :  { %p1909_p1 = pnand %p1907_p0, %p1904_p13 }
 0xa05   :  { %1912 = shalt.err (!%p1909_p1)
}
 0xa06   :  { %s1950_s30 = smov 128   ;;  %s1951_s2 = smov 8   ;;  %vm1422_vm9 = vcmask 0  }
 0xa07   :  { %1435 = dma.vmem_to_hbm [thread:$0]  %s1430_s21, 256, %s2219_s3, [#allocation4], %s1950_s30, %s1950_s30, %s1951_s2  }
 0xa08   :  { %s1952_s28 = smov [#allocation6]  }
 0xa09   :  { %s1442_s29 = sshll.u32 %s1952_s28, 4  ;;  %s1443_s29 = int_to_ptr.vmem [resolvable:$true] %s1442_s29 }
 0xa0a   :  { %s1913_s2 = scalar_lea.vmem %s1443_s29, 16  ;;  %s1917_s5 = scalar_lea.vmem %s1443_s29, 32 }
 0xa0b   :  { %p1914_p2 = scmp.ne.s32.totalorder %s1443_s29, %s1913_s2  ;;  %p1918_p3 = scmp.lt.s32.totalorder %s1443_s29, %s1443_s29 }
 0xa0c   :  { %p1919_p4 = scmp.lt.s32.totalorder %s1917_s5, %s1913_s2 }
 0xa0e   :  { %p1920_p5 = por %p1919_p4, %p1918_p3 }
 0xa10   :  { %p1921_p6 = pnand %p1920_p5, %p1914_p2 }
 0xa2f   :  { %s1768_s3 = spop %1767 }
 0xa30   :  { %s852_s14 = smul.f32 0.0625, %s1768_s3 }
 0xa58   :  { %v1027_v60 = vpop.xlane.xlu0 %1026 }
 0xa59   :  { %v1028_v61 = vrot.slane %v1027_v60, 4 }
 0xa5a   :  { %v855_v62 = vpop.xlane.xlu1 %854 }
 0xa5b   :  { %v1029_v63 = vadd.f32 %v1028_v61, %v1027_v60  ;;  %v856_v0 = vrot.slane %v855_v62, 4 }
 0xa5d   :  { %v1030_v1 = vrot.slane %v1029_v63, 2  ;;  %v857_v2 = vadd.f32 %v856_v0, %v855_v62 }
 0xa5e   :  { %v1040_v3 = vpop.xlane.xlu1 %1039 }
 0xa5f   :  { %v858_v4 = vrot.slane %v857_v2, 2  ;;  %v1041_v33 = vrot.slane %v1040_v3, 4  ;;  %v1031_v5 = vadd.f32 %v1030_v1, %v1029_v63 }
 0xa61   :  { %v1042_v6 = vadd.f32 %v1041_v33, %v1040_v3  ;;  %v1210_v7 = vpop.xlane.xlu0 %1209  ;;  %v859_v8 = vadd.f32 %v858_v4, %v857_v2  ;;  %v1032_v9 = vrot.slane %v1031_v5, 1 }
 0xa62   :  { %v1211_v10 = vrot.slane %v1210_v7, 4  ;;  %v1223_v11 = vpop.xlane.xlu1 %1222 }
 0xa63   :  { %v1043_v12 = vrot.slane %v1042_v6, 2  ;;  %v1224_v14 = vrot.slane %v1223_v11, 4  ;;  %v860_v15 = vrot.slane %v859_v8, 1  ;;  %v1033_v17 = vadd.f32 %v1032_v9, %v1031_v5 }
 0xa64   :  { %v1212_v16 = vadd.f32 %v1211_v10, %v1210_v7 }
 0xa65   :  { %v1225_v18 = vadd.f32 %v1224_v14, %v1223_v11  ;;  %v1391_v19 = vpop.xlane.xlu0 %1390  ;;  %v861_v20 = vadd.f32 %v860_v15, %v859_v8  ;;  %v1044_v21 = vadd.f32 %v1043_v12, %v1042_v6 }
 0xa66   :  { %v1213_v22 = vrot.slane %v1212_v16, 2  ;;  %v1392_v23 = vrot.slane %v1391_v19, 4  ;;  %v1404_v24 = vpop.xlane.xlu1 %1403 }
 0xa67   :  { %v1226_v25 = vrot.slane %v1225_v18, 2  ;;  %v1405_v26 = vrot.slane %v1404_v24, 4  ;;  %1769 = vpush %v861_v20  ;;  %v1045_v27 = vrot.slane %v1044_v21, 1 }
 0xa68   :  { %v1393_v28 = vadd.f32 %v1392_v23, %v1391_v19  ;;  %1771 = vpush %v1033_v17  ;;  %v1214_v29 = vadd.f32 %v1213_v22, %v1212_v16 }
 0xa69   :  { %v1406_v30 = vadd.f32 %v1405_v26, %v1404_v24  ;;  %v1046_v31 = vadd.f32 %v1045_v27, %v1044_v21  ;;  %v1227_v32 = vadd.f32 %v1226_v25, %v1225_v18 }
 0xa6a   :  { %v1394_v34 = vrot.slane %v1393_v28, 2  ;;  %v1215_v35 = vrot.slane %v1214_v29, 1 }
 0xa6b   :  { %v1407_v37 = vrot.slane %v1406_v30, 2  ;;  %1773 = vpush %v1046_v31  ;;  %v1228_v38 = vrot.slane %v1227_v32, 1 }
 0xa6c   :  { %v1395_v39 = vadd.f32 %v1394_v34, %v1393_v28  ;;  %v1216_v40 = vadd.f32 %v1215_v35, %v1214_v29 }
 0xa6d   :  { %v1408_v41 = vadd.f32 %v1407_v37, %v1406_v30  ;;  %v1229_v13 = vadd.f32 %v1228_v38, %v1227_v32 }
 0xa6e   :  { %1775 = vpush %v1216_v40  ;;  %v1396_v42 = vrot.slane %v1395_v39, 1 }
 0xa6f   :  { %1777 = vpush %v1229_v13  ;;  %v1409_v43 = vrot.slane %v1408_v41, 1 }
 0xa70   :  { %v1397_v44 = vadd.f32 %v1396_v42, %v1395_v39 }
 0xa71   :  { %v1410_v45 = vadd.f32 %v1409_v43, %v1408_v41 }
 0xa72   :  { %1779 = vpush %v1397_v44 }
 0xa73   :  { %1781 = vpush %v1410_v45 }
 0xa98   :  { %s1770_s7 = spop %1769 }
 0xa99   :  { %s1772_s8 = spop %1771  ;;  %s865_s10 = smul.f32 0.125, %s1770_s7 }
 0xa9a   :  { %s1037_s12 = smul.f32 0.0625, %s1772_s8 }
 0xa9b   :  { %s866_s1 = ssub.f32 %s852_s14, %s865_s10 }
 0xa9c   :  { %s1774_s0 = spop %1773 }
 0xa9d   :  { %s1050_s9 = smul.f32 0.125, %s1774_s0 }
 0xa9f   :  { %s1776_s11 = spop %1775  ;;  %s1051_s15 = ssub.f32 %s1037_s12, %s1050_s9 }
 0xaa0   :  { %s1778_s13 = spop %1777  ;;  %s1220_s16 = smul.f32 0.0625, %s1776_s11 }
 0xaa1   :  { %s1233_s17 = smul.f32 0.125, %s1778_s13  ;;  %s1416_s21 = sadd.f32 %s1051_s15, %s866_s1 }
 0xaa3   :  { %s1780_s18 = spop %1779  ;;  %s1234_s23 = ssub.f32 %s1220_s16, %s1233_s17 }
 0xaa4   :  { %s1401_s19 = smul.f32 0.0625, %s1780_s18  ;;  %s1782_s20 = spop %1781 }
 0xaa5   :  { %s1414_s22 = smul.f32 0.125, %s1782_s20 }
 0xaa6   :  { %s1417_s26 = smul.f32 0.4, %s1416_s21 }
 0xaa7   :  { %s1415_s24 = ssub.f32 %s1401_s19, %s1414_s22 }
 0xaa9   :  { %s1418_s25 = sadd.f32 %s1415_s24, %s1234_s23 }
 0xaab   :  { %s1419_s27 = smul.f32 0.6, %s1418_s25 }
 0xaad   :  { %s1420_s30 = sadd.f32 %s1419_s27, %s1417_s26 }
 0xaaf   :  { %v1421_v46 = vstv %s1420_s30 }
 0xab0   :  { %1423 = vst.msk [vmem:[#allocation6] sm:$0x1] %vm1422_vm9, %v1421_v46 }
 0xab1   :  { %1924 = shalt.err (!%p1921_p6)
}
 0xab2   :  { %s1925_s7 = scalar_lea.hbm %s2220_s4, 16 }
 0xab3   :  { %p1926_p7 = scmp.ne.s32.totalorder %s2220_s4, %s1925_s7  ;;  %p1929_p8 = scmp.lt.u32.totalorder %s1925_s7, %s2220_s4 }
 0xab5   :  { %p1931_p9 = pnand %p1929_p8, %p1926_p7 }
 0xab7   :  { %1934 = shalt.err (!%p1931_p9)
}
 0xab8   :  { %1445 = dma.vmem_to_hbm [thread:$0]  %s1443_s29, 16, %s2220_s4, [#allocation7]  }
 0xab9   :  { %1937 = dma.done.wait [#allocation4], 256  }
 0xaba   :  { %1938 = vsyncadd [#allocation4], 4294967040 }
 0xabb   :  { %1939 = dma.done.wait [#allocation7], 16  }
 0xabc   :  { %1940 = vsyncadd [#allocation7], 4294967280 }
 0xabd   :  { %1452 = vsyncpa [#allocation3], 1 }
 0xabe   :  { %1453 = vsyncpa [#allocation4], 1 }
 0xabf   :  { %1454 = vsyncpa [#allocation7], 1 }

</bundles_post_ra>
